<compile_context>
chip_gen: v7x
topology: tpu7x:2x2x1
jax: 0.10.0
libtpu: 0.0.40
codegen_flags: <defaults>
</compile_context>

<pallas_src>
import jax
import jax.numpy as jnp
from jax.experimental import pallas as pl
from jax.experimental.pallas import tpu as pltpu

BN_EPS = 1e-5
C_OUT = 64
MXU_DTYPE = jnp.bfloat16     # conv operands fed to the MXU (f32 accumulation)


# ---------------------------------------------------------------------------
# Kernel
# ---------------------------------------------------------------------------
def _bn_relu(y, g, bt):
    """Training-mode BatchNorm1d (biased stats over all N*L rows) + ReLU,
    fused into one per-channel scale/shift.  Stats in f32."""
    inv_m = 1.0 / y.shape[0]
    mean = jnp.sum(y, axis=0, keepdims=True) * inv_m                    # (1, C)
    var = jnp.sum(jnp.square(y - mean), axis=0, keepdims=True) * inv_m  # (1, C)
    scale = g * jax.lax.rsqrt(var + BN_EPS)                             # (1, C)
    shift = bt - mean * scale                                           # (1, C)
    return jnp.maximum(y * scale + shift, 0.0)


def embedding_kernel(xcol1_ref, w1_ref, wc_ref, ws_ref, p_ref, out_ref,
                     pool_ref):
    n = out_ref.shape[1] // C_OUT          # batch size
    lf = out_ref.shape[0]                  # final length (layers 3/4)
    l1 = xcol1_ref.shape[0] // n           # layer-1 valid-conv length
    l1p = l1 // 2                          # after maxpool(2)
    l2 = l1p - 2                           # layer-2 valid-conv length
    assert l2 // 2 == lf

    def prow(j):                           # packed (bias, gamma, beta) rows
        return p_ref[pl.ds(j, 1), :]       # (1, 64) f32

    def pooled(base, off, length):
        """MaxPool1d(2) fused read: max(y[base+off+2t], y[base+off+2t+1])."""
        a = pool_ref[pl.ds(base + off, length, stride=2), :]
        b = pool_ref[pl.ds(base + off + 1, length, stride=2), :]
        return jnp.maximum(a, b)

    def conv_cin64(center, sides, j, bias):
        """Two-matmul conv: center tap (M,64)@(64,64) stays in registers;
        side taps are one aligned 128-lane operand (M,128)@(128,64)."""
        yc = jnp.dot(center.astype(MXU_DTYPE), wc_ref[j],
                     preferred_element_type=jnp.float32)
        ys = jnp.dot(sides.astype(MXU_DTYPE), ws_ref[j],
                     preferred_element_type=jnp.float32)
        return yc + ys + bias

    zrow = jnp.zeros((1, C_OUT), jnp.float32)

    # ---- layer 1: conv(2->64, valid) + BN + ReLU ---------------------------
    # im2col slab was pre-assembled in the wrapper (K padded 6->8 with zero
    # columns; weight rows 6..7 are zero) -> a single (N*l1, 8)@(8, 64) matmul.
    y = jnp.dot(xcol1_ref[...], w1_ref[...],
                preferred_element_type=jnp.float32) + prow(0)
    y = _bn_relu(y, prow(1), prow(2))                         # (n*l1, 64) f32
    pool_ref[...] = y                                         # for fused pool

    # ---- layer 2: fused maxpool(2) + conv(64->64, valid) + BN + ReLU -------
    c_parts, s_parts = [], []
    for i in range(n):
        r0 = i * l1
        tap0 = pooled(r0, 0, l2)          # h[t]
        ctr = pooled(r0, 2, l2)           # h[t+1] (center tap, stays in regs)
        tap2 = pooled(r0, 4, l2)          # h[t+2]
        c_parts.append(ctr)
        s_parts.append(jnp.concatenate([tap0, tap2], axis=1))  # 128 lanes
    y = conv_cin64(jnp.concatenate(c_parts, axis=0),
                   jnp.concatenate(s_parts, axis=0), 0, prow(3))
    y = _bn_relu(y, prow(4), prow(5))                         # (n*l2, 64)

    # ---- layer 3: fused maxpool(2) + conv(64->64, pad=1) + BN + ReLU -------
    pool_ref[pl.ds(0, n * l2), :] = y
    c_parts, s_parts = [], []
    for i in range(n):
        r0 = i * l2
        h = pooled(r0, 0, lf)                                 # (lf, 64)
        tap0 = jnp.concatenate([zrow, h[0:lf - 1, :]], axis=0)   # h[t-1]
        tap2 = jnp.concatenate([h[1:lf, :], zrow], axis=0)       # h[t+1]
        c_parts.append(h)
        s_parts.append(jnp.concatenate([tap0, tap2], axis=1))
    y = conv_cin64(jnp.concatenate(c_parts, axis=0),
                   jnp.concatenate(s_parts, axis=0), 1, prow(6))
    y = _bn_relu(y, prow(7), prow(8))                         # (n*lf, 64)

    # ---- layer 4: conv(64->64, pad=1) + BN + ReLU ---------------------------
    # Center tap of the batched slab is `y` itself; only the side taps need
    # per-batch zero boundary rows.
    s_parts = []
    for i in range(n):
        yi = y[i * lf:(i + 1) * lf, :]
        tap0 = jnp.concatenate([zrow, yi[0:lf - 1, :]], axis=0)
        tap2 = jnp.concatenate([yi[1:lf, :], zrow], axis=0)
        s_parts.append(jnp.concatenate([tap0, tap2], axis=1))
    y = conv_cin64(y, jnp.concatenate(s_parts, axis=0), 2, prow(9))
    y = _bn_relu(y, prow(10), prow(11))                       # (n*lf, 64)

    # ---- output: single lane-dense (lf, n*64) store -------------------------
    out = jnp.concatenate([y[i * lf:(i + 1) * lf, :] for i in range(n)], axis=1)
    out_ref[...] = out.astype(out_ref.dtype)


# ---------------------------------------------------------------------------
# Host-side glue
# ---------------------------------------------------------------------------
def init_params(key):
    """Deterministic synthetic parameters (PyTorch layouts: w=(Cout,Cin,K))."""
    params = {}
    cins = [2, C_OUT, C_OUT, C_OUT]
    keys = jax.random.split(key, 8)
    for i in range(4):
        kw, kb = jax.random.split(keys[2 * i])
        kg, kbt = jax.random.split(keys[2 * i + 1])
        scale = 1.0 / jnp.sqrt(jnp.float32(cins[i] * 3))
        params[f"w{i + 1}"] = jax.random.normal(kw, (C_OUT, cins[i], 3), jnp.float32) * scale
        params[f"b{i + 1}"] = jax.random.normal(kb, (C_OUT,), jnp.float32) * 0.1
        params[f"g{i + 1}"] = 1.0 + 0.1 * jax.random.normal(kg, (C_OUT,), jnp.float32)
        params[f"bt{i + 1}"] = 0.1 * jax.random.normal(kbt, (C_OUT,), jnp.float32)
    return params


@jax.jit
def embedding_function_forward(x_ncw, params):
    """PyTorch-equivalent forward.  x_ncw: (N, 2, L) -> (N, 64, Lf)."""
    n, _, length = x_ncw.shape
    l1 = length - 2              # layer1 valid conv
    l1p = l1 // 2                # pool
    l2 = l1p - 2                 # layer2 valid conv
    lf = l2 // 2                 # pool; layers 3/4 keep length (pad=1)

    x_nlc = jnp.transpose(x_ncw, (0, 2, 1)).astype(jnp.float32)   # (N, L, 2)

    # Layer-1 im2col assembled on the host (column index = k*2 + ci),
    # K padded 6 -> 8 with explicit zero columns / zero weight rows.
    xcol1 = jnp.concatenate([x_nlc[:, k:k + l1, :] for k in range(3)], axis=-1)
    xcol1 = jnp.pad(xcol1, ((0, 0), (0, 0), (0, 2)))
    xcol1 = xcol1.reshape(n * l1, 8).astype(MXU_DTYPE)            # (N*l1, 8)

    w1col = jnp.transpose(params["w1"], (2, 1, 0)).reshape(6, C_OUT)
    w1col = jnp.pad(w1col, ((0, 2), (0, 0))).astype(MXU_DTYPE)    # (8, 64)

    # Layers 2-4: center-tap weight stack (Cin,Cout) and side-tap stack
    # ([tap0;tap2] -> 128 rows), already transposed for im2col matmuls.
    wc = jnp.stack([jnp.transpose(params[f"w{i}"][:, :, 1])
                    for i in (2, 3, 4)]).astype(MXU_DTYPE)        # (3, 64, 64)
    ws = jnp.stack([jnp.concatenate(
        [jnp.transpose(params[f"w{i}"][:, :, 0]),
         jnp.transpose(params[f"w{i}"][:, :, 2])], axis=0)
        for i in (2, 3, 4)]).astype(MXU_DTYPE)                    # (3, 128, 64)

    # Packed per-channel parameter table: rows = (b, g, bt) x 4 layers.
    pvec = jnp.stack([params[k] for i in (1, 2, 3, 4)
                      for k in (f"b{i}", f"g{i}", f"bt{i}")]
                     ).astype(jnp.float32)                        # (12, 64)

    out_packed = pl.pallas_call(
        embedding_kernel,
        out_shape=jax.ShapeDtypeStruct((lf, n * C_OUT), jnp.float32),
        in_specs=[pl.BlockSpec(memory_space=pltpu.MemorySpace.VMEM)] * 5,
        out_specs=pl.BlockSpec(memory_space=pltpu.MemorySpace.VMEM),
        scratch_shapes=[
            pltpu.VMEM((n * l1, C_OUT), jnp.float32),   # fused maxpool scratch
        ],
    )(xcol1, w1col, wc, ws, pvec)

    # (Lf, N*C) -> (N, C, Lf)   (back to PyTorch NCW)
    return jnp.transpose(out_packed.reshape(lf, n, C_OUT), (1, 2, 0))


def reference_forward(x_ncw, params, matmul_dtype=jnp.float32):
    """Plain-JAX reference.  matmul_dtype=bf16 mirrors the kernel's MXU
    operand precision exactly (f32 accumulation, f32 BN stats / pooling)."""
    x = jnp.transpose(x_ncw, (0, 2, 1)).astype(jnp.float32)

    def conv(xv, w_oik, b, pad):
        w_wio = jnp.transpose(w_oik, (2, 1, 0))
        y = jax.lax.conv_general_dilated(
            xv.astype(matmul_dtype), w_wio.astype(matmul_dtype),
            window_strides=(1,), padding=[(pad, pad)],
            dimension_numbers=("NWC", "WIO", "NWC"),
            preferred_element_type=jnp.float32)
        return y + b[None, None, :]

    def bn_relu(y, g, bt):
        mean = jnp.mean(y, axis=(0, 1), keepdims=True)
        var = jnp.mean(jnp.square(y - mean), axis=(0, 1), keepdims=True)
        return jnp.maximum((y - mean) * jax.lax.rsqrt(var + BN_EPS)
                           * g[None, None, :] + bt[None, None, :], 0.0)

    def pool(y):
        nb, lb, cb = y.shape
        lp = lb // 2
        return jnp.max(y[:, :2 * lp].reshape(nb, lp, 2, cb), axis=2)

    h = pool(bn_relu(conv(x, params["w1"], params["b1"], 0), params["g1"], params["bt1"]))
    h = pool(bn_relu(conv(h, params["w2"], params["b2"], 0), params["g2"], params["bt2"]))
    h = bn_relu(conv(h, params["w3"], params["b3"], 1), params["g3"], params["bt3"])
    h = bn_relu(conv(h, params["w4"], params["b4"], 1), params["g4"], params["bt4"])
    return jnp.transpose(h, (0, 2, 1))


if __name__ == "__main__":
    key = jax.random.PRNGKey(0)
    kx, kp = jax.random.split(key)

    # PyTorch-style input: (batch=2, channels=2, length=64)
    x = jax.random.normal(kx, (2, 2, 64), jnp.float32)
    params = init_params(kp)

    out = jax.block_until_ready(embedding_function_forward(x, params))
    assert out.shape == (2, C_OUT, 14), out.shape

    # (1) Mechanics check at matched precision (bf16 MXU operands, f32 accum /
    #     BN stats / pooling) -- any layout / shift / im2col bug cannot hide.
    ref_bf16 = reference_forward(x, params, matmul_dtype=MXU_DTYPE)
    if not bool(jnp.allclose(out, ref_bf16, atol=1e-2, rtol=1e-2)):
        raise AssertionError("Pallas kernel mismatch vs precision-matched JAX reference")

    # (2) End-to-end drift bound vs the pure-f32 module semantics; the only
    #     deviation is the bf16 cast of the conv operands fed to the MXU.
    ref_f32 = reference_forward(x, params, matmul_dtype=jnp.float32)
    if not bool(jnp.allclose(out, ref_f32, atol=7e-2, rtol=7e-2)):
        raise AssertionError("Pallas kernel drift vs f32 reference exceeds bound")

    print("KERNEL_OK")
</pallas_src>

<mosaic_0001>
module attributes {stable_mosaic.version = 11 : i64} {
  func.func @embedding_kernel(%arg0: memref<124x8xbf16, #tpu.memory_space<vmem>>, %arg1: memref<8x64xbf16, #tpu.memory_space<vmem>>, %arg2: memref<3x64x64xbf16, #tpu.memory_space<vmem>>, %arg3: memref<3x128x64xbf16, #tpu.memory_space<vmem>>, %arg4: memref<12x64xf32, #tpu.memory_space<vmem>>, %arg5: memref<14x128xf32, #tpu.memory_space<vmem>>, %arg6: memref<124x64xf32, #tpu.memory_space<vmem>>) attributes {dimension_semantics = [], scalar_prefetch = 0 : i64, scratch_operands = 1 : i64, tpu.core_type = #tpu.core_type<tc>} {
    %cst = arith.constant 0.000000e+00 : f32
    %0 = vector.broadcast %cst : f32 to vector<1x64xf32>
    %c0 = arith.constant 0 : index
    %c0_0 = arith.constant 0 : index
    %1 = vector.load %arg0[%c0, %c0_0] : memref<124x8xbf16, #tpu.memory_space<vmem>>, vector<124x8xbf16>
    %c0_1 = arith.constant 0 : index
    %c0_2 = arith.constant 0 : index
    %2 = vector.load %arg1[%c0_1, %c0_2] : memref<8x64xbf16, #tpu.memory_space<vmem>>, vector<8x64xbf16>
    %cst_3 = arith.constant dense<0.000000e+00> : vector<124x64xf32>
    %3 = tpu.matmul %1, %2, %cst_3 {dimension_numbers = #tpu.dot_dimension_numbers<[1], [0], [0], [1], [0, 0, 1, 1], [], []>} : vector<124x8xbf16>, vector<8x64xbf16>, vector<124x64xf32> -> vector<124x64xf32>
    %c0_4 = arith.constant 0 : index
    %c0_5 = arith.constant 0 : index
    %4 = vector.load %arg4[%c0_4, %c0_5] : memref<12x64xf32, #tpu.memory_space<vmem>>, vector<1x64xf32>
    %5 = vector.broadcast %4 : vector<1x64xf32> to vector<124x64xf32>
    %6 = arith.addf %3, %5 : vector<124x64xf32>
    %c1 = arith.constant 1 : index
    %c0_6 = arith.constant 0 : index
    %7 = vector.load %arg4[%c1, %c0_6] : memref<12x64xf32, #tpu.memory_space<vmem>>, vector<1x64xf32>
    %c2 = arith.constant 2 : index
    %c0_7 = arith.constant 0 : index
    %8 = vector.load %arg4[%c2, %c0_7] : memref<12x64xf32, #tpu.memory_space<vmem>>, vector<1x64xf32>
    %cst_8 = arith.constant dense<0.000000e+00> : vector<64xf32>
    %9 = vector.multi_reduction <add>, %6, %cst_8 [0] : vector<124x64xf32> to vector<64xf32>
    %10 = vector.shape_cast %9 : vector<64xf32> to vector<1x64xf32>
    %cst_9 = arith.constant 0.00806451589 : f32
    %11 = vector.broadcast %cst_9 : f32 to vector<1x64xf32>
    %12 = arith.mulf %10, %11 : vector<1x64xf32>
    %13 = vector.broadcast %12 : vector<1x64xf32> to vector<124x64xf32>
    %14 = arith.subf %6, %13 : vector<124x64xf32>
    %15 = arith.mulf %14, %14 : vector<124x64xf32>
    %cst_10 = arith.constant dense<0.000000e+00> : vector<64xf32>
    %16 = vector.multi_reduction <add>, %15, %cst_10 [0] : vector<124x64xf32> to vector<64xf32>
    %17 = vector.shape_cast %16 : vector<64xf32> to vector<1x64xf32>
    %cst_11 = arith.constant 0.00806451589 : f32
    %18 = vector.broadcast %cst_11 : f32 to vector<1x64xf32>
    %19 = arith.mulf %17, %18 : vector<1x64xf32>
    %cst_12 = arith.constant 9.99999974E-6 : f32
    %20 = vector.broadcast %cst_12 : f32 to vector<1x64xf32>
    %21 = arith.addf %19, %20 : vector<1x64xf32>
    %22 = math.rsqrt %21 : vector<1x64xf32>
    %23 = arith.mulf %7, %22 : vector<1x64xf32>
    %24 = arith.mulf %12, %23 : vector<1x64xf32>
    %25 = arith.subf %8, %24 : vector<1x64xf32>
    %26 = vector.broadcast %23 : vector<1x64xf32> to vector<124x64xf32>
    %27 = arith.mulf %6, %26 : vector<124x64xf32>
    %28 = vector.broadcast %25 : vector<1x64xf32> to vector<124x64xf32>
    %29 = arith.addf %27, %28 : vector<124x64xf32>
    %cst_13 = arith.constant 0.000000e+00 : f32
    %30 = vector.broadcast %cst_13 : f32 to vector<124x64xf32>
    %31 = arith.maximumf %29, %30 : vector<124x64xf32>
    %c0_14 = arith.constant 0 : index
    %c0_15 = arith.constant 0 : index
    %32 = vector.load %arg6[%c0_14, %c0_15] : memref<124x64xf32, #tpu.memory_space<vmem>>, vector<124x64xf32>
    tpu.vector_store %arg6[%c0_14, %c0_15], %31 {strides = array<i32>} : memref<124x64xf32, #tpu.memory_space<vmem>>, vector<124x64xf32>,
    %c0_16 = arith.constant 0 : index
    %c0_17 = arith.constant 0 : index
    %33 = tpu.strided_load %arg6[%c0_16, %c0_17] {strides = array<i32: 2, 1>} : memref<124x64xf32, #tpu.memory_space<vmem>>, vector<29x64xf32>
    %c1_18 = arith.constant 1 : index
    %c0_19 = arith.constant 0 : index
    %34 = tpu.strided_load %arg6[%c1_18, %c0_19] {strides = array<i32: 2, 1>} : memref<124x64xf32, #tpu.memory_space<vmem>>, vector<29x64xf32>
    %35 = arith.maximumf %33, %34 : vector<29x64xf32>
    %c2_20 = arith.constant 2 : index
    %c0_21 = arith.constant 0 : index
    %36 = tpu.strided_load %arg6[%c2_20, %c0_21] {strides = array<i32: 2, 1>} : memref<124x64xf32, #tpu.memory_space<vmem>>, vector<29x64xf32>
    %c3 = arith.constant 3 : index
    %c0_22 = arith.constant 0 : index
    %37 = tpu.strided_load %arg6[%c3, %c0_22] {strides = array<i32: 2, 1>} : memref<124x64xf32, #tpu.memory_space<vmem>>, vector<29x64xf32>
    %38 = arith.maximumf %36, %37 : vector<29x64xf32>
    %c4 = arith.constant 4 : index
    %c0_23 = arith.constant 0 : index
    %39 = tpu.strided_load %arg6[%c4, %c0_23] {strides = array<i32: 2, 1>} : memref<124x64xf32, #tpu.memory_space<vmem>>, vector<29x64xf32>
    %c5 = arith.constant 5 : index
    %c0_24 = arith.constant 0 : index
    %40 = tpu.strided_load %arg6[%c5, %c0_24] {strides = array<i32: 2, 1>} : memref<124x64xf32, #tpu.memory_space<vmem>>, vector<29x64xf32>
    %41 = arith.maximumf %39, %40 : vector<29x64xf32>
    %42 = tpu.concatenate %35, %41 in 1 : vector<29x64xf32>, vector<29x64xf32> -> vector<29x128xf32>
    %c62 = arith.constant 62 : index
    %c0_25 = arith.constant 0 : index
    %43 = tpu.strided_load %arg6[%c62, %c0_25] {strides = array<i32: 2, 1>} : memref<124x64xf32, #tpu.memory_space<vmem>>, vector<29x64xf32>
    %c63 = arith.constant 63 : index
    %c0_26 = arith.constant 0 : index
    %44 = tpu.strided_load %arg6[%c63, %c0_26] {strides = array<i32: 2, 1>} : memref<124x64xf32, #tpu.memory_space<vmem>>, vector<29x64xf32>
    %45 = arith.maximumf %43, %44 : vector<29x64xf32>
    %c64 = arith.constant 64 : index
    %c0_27 = arith.constant 0 : index
    %46 = tpu.strided_load %arg6[%c64, %c0_27] {strides = array<i32: 2, 1>} : memref<124x64xf32, #tpu.memory_space<vmem>>, vector<29x64xf32>
    %c65 = arith.constant 65 : index
    %c0_28 = arith.constant 0 : index
    %47 = tpu.strided_load %arg6[%c65, %c0_28] {strides = array<i32: 2, 1>} : memref<124x64xf32, #tpu.memory_space<vmem>>, vector<29x64xf32>
    %48 = arith.maximumf %46, %47 : vector<29x64xf32>
    %c66 = arith.constant 66 : index
    %c0_29 = arith.constant 0 : index
    %49 = tpu.strided_load %arg6[%c66, %c0_29] {strides = array<i32: 2, 1>} : memref<124x64xf32, #tpu.memory_space<vmem>>, vector<29x64xf32>
    %c67 = arith.constant 67 : index
    %c0_30 = arith.constant 0 : index
    %50 = tpu.strided_load %arg6[%c67, %c0_30] {strides = array<i32: 2, 1>} : memref<124x64xf32, #tpu.memory_space<vmem>>, vector<29x64xf32>
    %51 = arith.maximumf %49, %50 : vector<29x64xf32>
    %52 = tpu.concatenate %45, %51 in 1 : vector<29x64xf32>, vector<29x64xf32> -> vector<29x128xf32>
    %53 = tpu.concatenate %38, %48 in 0 : vector<29x64xf32>, vector<29x64xf32> -> vector<58x64xf32>
    %54 = tpu.concatenate %42, %52 in 0 : vector<29x128xf32>, vector<29x128xf32> -> vector<58x128xf32>
    %c3_31 = arith.constant 3 : index
    %c0_32 = arith.constant 0 : index
    %55 = vector.load %arg4[%c3_31, %c0_32] : memref<12x64xf32, #tpu.memory_space<vmem>>, vector<1x64xf32>
    %56 = arith.truncf %53 : vector<58x64xf32> to vector<58x64xbf16>
    %c0_33 = arith.constant 0 : index
    %c0_34 = arith.constant 0 : index
    %c0_35 = arith.constant 0 : index
    %57 = vector.load %arg2[%c0_33, %c0_34, %c0_35] : memref<3x64x64xbf16, #tpu.memory_space<vmem>>, vector<1x64x64xbf16>
    %58 = vector.shape_cast %57 : vector<1x64x64xbf16> to vector<64x64xbf16>
    %cst_36 = arith.constant dense<0.000000e+00> : vector<58x64xf32>
    %59 = tpu.matmul %56, %58, %cst_36 {dimension_numbers = #tpu.dot_dimension_numbers<[1], [0], [0], [1], [0, 0, 1, 1], [], []>} : vector<58x64xbf16>, vector<64x64xbf16>, vector<58x64xf32> -> vector<58x64xf32>
    %60 = arith.truncf %54 : vector<58x128xf32> to vector<58x128xbf16>
    %c0_37 = arith.constant 0 : index
    %c0_38 = arith.constant 0 : index
    %c0_39 = arith.constant 0 : index
    %61 = vector.load %arg3[%c0_37, %c0_38, %c0_39] : memref<3x128x64xbf16, #tpu.memory_space<vmem>>, vector<1x128x64xbf16>
    %62 = vector.shape_cast %61 : vector<1x128x64xbf16> to vector<128x64xbf16>
    %cst_40 = arith.constant dense<0.000000e+00> : vector<58x64xf32>
    %63 = tpu.matmul %60, %62, %cst_40 {dimension_numbers = #tpu.dot_dimension_numbers<[1], [0], [0], [1], [0, 0, 1, 1], [], []>} : vector<58x128xbf16>, vector<128x64xbf16>, vector<58x64xf32> -> vector<58x64xf32>
    %64 = arith.addf %59, %63 : vector<58x64xf32>
    %65 = vector.broadcast %55 : vector<1x64xf32> to vector<58x64xf32>
    %66 = arith.addf %64, %65 : vector<58x64xf32>
    %c4_41 = arith.constant 4 : index
    %c0_42 = arith.constant 0 : index
    %67 = vector.load %arg4[%c4_41, %c0_42] : memref<12x64xf32, #tpu.memory_space<vmem>>, vector<1x64xf32>
    %c5_43 = arith.constant 5 : index
    %c0_44 = arith.constant 0 : index
    %68 = vector.load %arg4[%c5_43, %c0_44] : memref<12x64xf32, #tpu.memory_space<vmem>>, vector<1x64xf32>
    %cst_45 = arith.constant dense<0.000000e+00> : vector<64xf32>
    %69 = vector.multi_reduction <add>, %66, %cst_45 [0] : vector<58x64xf32> to vector<64xf32>
    %70 = vector.shape_cast %69 : vector<64xf32> to vector<1x64xf32>
    %cst_46 = arith.constant 0.0172413792 : f32
    %71 = vector.broadcast %cst_46 : f32 to vector<1x64xf32>
    %72 = arith.mulf %70, %71 : vector<1x64xf32>
    %73 = vector.broadcast %72 : vector<1x64xf32> to vector<58x64xf32>
    %74 = arith.subf %66, %73 : vector<58x64xf32>
    %75 = arith.mulf %74, %74 : vector<58x64xf32>
    %cst_47 = arith.constant dense<0.000000e+00> : vector<64xf32>
    %76 = vector.multi_reduction <add>, %75, %cst_47 [0] : vector<58x64xf32> to vector<64xf32>
    %77 = vector.shape_cast %76 : vector<64xf32> to vector<1x64xf32>
    %cst_48 = arith.constant 0.0172413792 : f32
    %78 = vector.broadcast %cst_48 : f32 to vector<1x64xf32>
    %79 = arith.mulf %77, %78 : vector<1x64xf32>
    %cst_49 = arith.constant 9.99999974E-6 : f32
    %80 = vector.broadcast %cst_49 : f32 to vector<1x64xf32>
    %81 = arith.addf %79, %80 : vector<1x64xf32>
    %82 = math.rsqrt %81 : vector<1x64xf32>
    %83 = arith.mulf %67, %82 : vector<1x64xf32>
    %84 = arith.mulf %72, %83 : vector<1x64xf32>
    %85 = arith.subf %68, %84 : vector<1x64xf32>
    %86 = vector.broadcast %83 : vector<1x64xf32> to vector<58x64xf32>
    %87 = arith.mulf %66, %86 : vector<58x64xf32>
    %88 = vector.broadcast %85 : vector<1x64xf32> to vector<58x64xf32>
    %89 = arith.addf %87, %88 : vector<58x64xf32>
    %cst_50 = arith.constant 0.000000e+00 : f32
    %90 = vector.broadcast %cst_50 : f32 to vector<58x64xf32>
    %91 = arith.maximumf %89, %90 : vector<58x64xf32>
    %c0_51 = arith.constant 0 : index
    %c0_52 = arith.constant 0 : index
    %92 = vector.load %arg6[%c0_51, %c0_52] : memref<124x64xf32, #tpu.memory_space<vmem>>, vector<58x64xf32>
    tpu.vector_store %arg6[%c0_51, %c0_52], %91 {strides = array<i32>} : memref<124x64xf32, #tpu.memory_space<vmem>>, vector<58x64xf32>,
    %c0_53 = arith.constant 0 : index
    %c0_54 = arith.constant 0 : index
    %93 = tpu.strided_load %arg6[%c0_53, %c0_54] {strides = array<i32: 2, 1>} : memref<124x64xf32, #tpu.memory_space<vmem>>, vector<14x64xf32>
    %c1_55 = arith.constant 1 : index
    %c0_56 = arith.constant 0 : index
    %94 = tpu.strided_load %arg6[%c1_55, %c0_56] {strides = array<i32: 2, 1>} : memref<124x64xf32, #tpu.memory_space<vmem>>, vector<14x64xf32>
    %95 = arith.maximumf %93, %94 : vector<14x64xf32>
    %96 = vector.extract_strided_slice %95 {offsets = [0, 0], sizes = [13, 64], strides = [1, 1]} : vector<14x64xf32> to vector<13x64xf32>
    %97 = tpu.concatenate %0, %96 in 0 : vector<1x64xf32>, vector<13x64xf32> -> vector<14x64xf32>
    %98 = vector.extract_strided_slice %95 {offsets = [1, 0], sizes = [13, 64], strides = [1, 1]} : vector<14x64xf32> to vector<13x64xf32>
    %99 = tpu.concatenate %98, %0 in 0 : vector<13x64xf32>, vector<1x64xf32> -> vector<14x64xf32>
    %100 = tpu.concatenate %97, %99 in 1 : vector<14x64xf32>, vector<14x64xf32> -> vector<14x128xf32>
    %c29 = arith.constant 29 : index
    %c0_57 = arith.constant 0 : index
    %101 = tpu.strided_load %arg6[%c29, %c0_57] {strides = array<i32: 2, 1>} : memref<124x64xf32, #tpu.memory_space<vmem>>, vector<14x64xf32>
    %c30 = arith.constant 30 : index
    %c0_58 = arith.constant 0 : index
    %102 = tpu.strided_load %arg6[%c30, %c0_58] {strides = array<i32: 2, 1>} : memref<124x64xf32, #tpu.memory_space<vmem>>, vector<14x64xf32>
    %103 = arith.maximumf %101, %102 : vector<14x64xf32>
    %104 = vector.extract_strided_slice %103 {offsets = [0, 0], sizes = [13, 64], strides = [1, 1]} : vector<14x64xf32> to vector<13x64xf32>
    %105 = tpu.concatenate %0, %104 in 0 : vector<1x64xf32>, vector<13x64xf32> -> vector<14x64xf32>
    %106 = vector.extract_strided_slice %103 {offsets = [1, 0], sizes = [13, 64], strides = [1, 1]} : vector<14x64xf32> to vector<13x64xf32>
    %107 = tpu.concatenate %106, %0 in 0 : vector<13x64xf32>, vector<1x64xf32> -> vector<14x64xf32>
    %108 = tpu.concatenate %105, %107 in 1 : vector<14x64xf32>, vector<14x64xf32> -> vector<14x128xf32>
    %109 = tpu.concatenate %95, %103 in 0 : vector<14x64xf32>, vector<14x64xf32> -> vector<28x64xf32>
    %110 = tpu.concatenate %100, %108 in 0 : vector<14x128xf32>, vector<14x128xf32> -> vector<28x128xf32>
    %c6 = arith.constant 6 : index
    %c0_59 = arith.constant 0 : index
    %111 = vector.load %arg4[%c6, %c0_59] : memref<12x64xf32, #tpu.memory_space<vmem>>, vector<1x64xf32>
    %112 = arith.truncf %109 : vector<28x64xf32> to vector<28x64xbf16>
    %c1_60 = arith.constant 1 : index
    %c0_61 = arith.constant 0 : index
    %c0_62 = arith.constant 0 : index
    %113 = vector.load %arg2[%c1_60, %c0_61, %c0_62] : memref<3x64x64xbf16, #tpu.memory_space<vmem>>, vector<1x64x64xbf16>
    %114 = vector.shape_cast %113 : vector<1x64x64xbf16> to vector<64x64xbf16>
    %cst_63 = arith.constant dense<0.000000e+00> : vector<28x64xf32>
    %115 = tpu.matmul %112, %114, %cst_63 {dimension_numbers = #tpu.dot_dimension_numbers<[1], [0], [0], [1], [0, 0, 1, 1], [], []>} : vector<28x64xbf16>, vector<64x64xbf16>, vector<28x64xf32> -> vector<28x64xf32>
    %116 = arith.truncf %110 : vector<28x128xf32> to vector<28x128xbf16>
    %c1_64 = arith.constant 1 : index
    %c0_65 = arith.constant 0 : index
    %c0_66 = arith.constant 0 : index
    %117 = vector.load %arg3[%c1_64, %c0_65, %c0_66] : memref<3x128x64xbf16, #tpu.memory_space<vmem>>, vector<1x128x64xbf16>
    %118 = vector.shape_cast %117 : vector<1x128x64xbf16> to vector<128x64xbf16>
    %cst_67 = arith.constant dense<0.000000e+00> : vector<28x64xf32>
    %119 = tpu.matmul %116, %118, %cst_67 {dimension_numbers = #tpu.dot_dimension_numbers<[1], [0], [0], [1], [0, 0, 1, 1], [], []>} : vector<28x128xbf16>, vector<128x64xbf16>, vector<28x64xf32> -> vector<28x64xf32>
    %120 = arith.addf %115, %119 : vector<28x64xf32>
    %121 = vector.broadcast %111 : vector<1x64xf32> to vector<28x64xf32>
    %122 = arith.addf %120, %121 : vector<28x64xf32>
    %c7 = arith.constant 7 : index
    %c0_68 = arith.constant 0 : index
    %123 = vector.load %arg4[%c7, %c0_68] : memref<12x64xf32, #tpu.memory_space<vmem>>, vector<1x64xf32>
    %c8 = arith.constant 8 : index
    %c0_69 = arith.constant 0 : index
    %124 = vector.load %arg4[%c8, %c0_69] : memref<12x64xf32, #tpu.memory_space<vmem>>, vector<1x64xf32>
    %cst_70 = arith.constant dense<0.000000e+00> : vector<64xf32>
    %125 = vector.multi_reduction <add>, %122, %cst_70 [0] : vector<28x64xf32> to vector<64xf32>
    %126 = vector.shape_cast %125 : vector<64xf32> to vector<1x64xf32>
    %cst_71 = arith.constant 0.0357142873 : f32
    %127 = vector.broadcast %cst_71 : f32 to vector<1x64xf32>
    %128 = arith.mulf %126, %127 : vector<1x64xf32>
    %129 = vector.broadcast %128 : vector<1x64xf32> to vector<28x64xf32>
    %130 = arith.subf %122, %129 : vector<28x64xf32>
    %131 = arith.mulf %130, %130 : vector<28x64xf32>
    %cst_72 = arith.constant dense<0.000000e+00> : vector<64xf32>
    %132 = vector.multi_reduction <add>, %131, %cst_72 [0] : vector<28x64xf32> to vector<64xf32>
    %133 = vector.shape_cast %132 : vector<64xf32> to vector<1x64xf32>
    %cst_73 = arith.constant 0.0357142873 : f32
    %134 = vector.broadcast %cst_73 : f32 to vector<1x64xf32>
    %135 = arith.mulf %133, %134 : vector<1x64xf32>
    %cst_74 = arith.constant 9.99999974E-6 : f32
    %136 = vector.broadcast %cst_74 : f32 to vector<1x64xf32>
    %137 = arith.addf %135, %136 : vector<1x64xf32>
    %138 = math.rsqrt %137 : vector<1x64xf32>
    %139 = arith.mulf %123, %138 : vector<1x64xf32>
    %140 = arith.mulf %128, %139 : vector<1x64xf32>
    %141 = arith.subf %124, %140 : vector<1x64xf32>
    %142 = vector.broadcast %139 : vector<1x64xf32> to vector<28x64xf32>
    %143 = arith.mulf %122, %142 : vector<28x64xf32>
    %144 = vector.broadcast %141 : vector<1x64xf32> to vector<28x64xf32>
    %145 = arith.addf %143, %144 : vector<28x64xf32>
    %cst_75 = arith.constant 0.000000e+00 : f32
    %146 = vector.broadcast %cst_75 : f32 to vector<28x64xf32>
    %147 = arith.maximumf %145, %146 : vector<28x64xf32>
    %148 = vector.extract_strided_slice %147 {offsets = [0, 0], sizes = [14, 64], strides = [1, 1]} : vector<28x64xf32> to vector<14x64xf32>
    %149 = vector.extract_strided_slice %148 {offsets = [0, 0], sizes = [13, 64], strides = [1, 1]} : vector<14x64xf32> to vector<13x64xf32>
    %150 = tpu.concatenate %0, %149 in 0 : vector<1x64xf32>, vector<13x64xf32> -> vector<14x64xf32>
    %151 = vector.extract_strided_slice %148 {offsets = [1, 0], sizes = [13, 64], strides = [1, 1]} : vector<14x64xf32> to vector<13x64xf32>
    %152 = tpu.concatenate %151, %0 in 0 : vector<13x64xf32>, vector<1x64xf32> -> vector<14x64xf32>
    %153 = tpu.concatenate %150, %152 in 1 : vector<14x64xf32>, vector<14x64xf32> -> vector<14x128xf32>
    %154 = vector.extract_strided_slice %147 {offsets = [14, 0], sizes = [14, 64], strides = [1, 1]} : vector<28x64xf32> to vector<14x64xf32>
    %155 = vector.extract_strided_slice %154 {offsets = [0, 0], sizes = [13, 64], strides = [1, 1]} : vector<14x64xf32> to vector<13x64xf32>
    %156 = tpu.concatenate %0, %155 in 0 : vector<1x64xf32>, vector<13x64xf32> -> vector<14x64xf32>
    %157 = vector.extract_strided_slice %154 {offsets = [1, 0], sizes = [13, 64], strides = [1, 1]} : vector<14x64xf32> to vector<13x64xf32>
    %158 = tpu.concatenate %157, %0 in 0 : vector<13x64xf32>, vector<1x64xf32> -> vector<14x64xf32>
    %159 = tpu.concatenate %156, %158 in 1 : vector<14x64xf32>, vector<14x64xf32> -> vector<14x128xf32>
    %160 = tpu.concatenate %153, %159 in 0 : vector<14x128xf32>, vector<14x128xf32> -> vector<28x128xf32>
    %c9 = arith.constant 9 : index
    %c0_76 = arith.constant 0 : index
    %161 = vector.load %arg4[%c9, %c0_76] : memref<12x64xf32, #tpu.memory_space<vmem>>, vector<1x64xf32>
    %162 = arith.truncf %147 : vector<28x64xf32> to vector<28x64xbf16>
    %c2_77 = arith.constant 2 : index
    %c0_78 = arith.constant 0 : index
    %c0_79 = arith.constant 0 : index
    %163 = vector.load %arg2[%c2_77, %c0_78, %c0_79] : memref<3x64x64xbf16, #tpu.memory_space<vmem>>, vector<1x64x64xbf16>
    %164 = vector.shape_cast %163 : vector<1x64x64xbf16> to vector<64x64xbf16>
    %cst_80 = arith.constant dense<0.000000e+00> : vector<28x64xf32>
    %165 = tpu.matmul %162, %164, %cst_80 {dimension_numbers = #tpu.dot_dimension_numbers<[1], [0], [0], [1], [0, 0, 1, 1], [], []>} : vector<28x64xbf16>, vector<64x64xbf16>, vector<28x64xf32> -> vector<28x64xf32>
    %166 = arith.truncf %160 : vector<28x128xf32> to vector<28x128xbf16>
    %c2_81 = arith.constant 2 : index
    %c0_82 = arith.constant 0 : index
    %c0_83 = arith.constant 0 : index
    %167 = vector.load %arg3[%c2_81, %c0_82, %c0_83] : memref<3x128x64xbf16, #tpu.memory_space<vmem>>, vector<1x128x64xbf16>
    %168 = vector.shape_cast %167 : vector<1x128x64xbf16> to vector<128x64xbf16>
    %cst_84 = arith.constant dense<0.000000e+00> : vector<28x64xf32>
    %169 = tpu.matmul %166, %168, %cst_84 {dimension_numbers = #tpu.dot_dimension_numbers<[1], [0], [0], [1], [0, 0, 1, 1], [], []>} : vector<28x128xbf16>, vector<128x64xbf16>, vector<28x64xf32> -> vector<28x64xf32>
    %170 = arith.addf %165, %169 : vector<28x64xf32>
    %171 = vector.broadcast %161 : vector<1x64xf32> to vector<28x64xf32>
    %172 = arith.addf %170, %171 : vector<28x64xf32>
    %c10 = arith.constant 10 : index
    %c0_85 = arith.constant 0 : index
    %173 = vector.load %arg4[%c10, %c0_85] : memref<12x64xf32, #tpu.memory_space<vmem>>, vector<1x64xf32>
    %c11 = arith.constant 11 : index
    %c0_86 = arith.constant 0 : index
    %174 = vector.load %arg4[%c11, %c0_86] : memref<12x64xf32, #tpu.memory_space<vmem>>, vector<1x64xf32>
    %cst_87 = arith.constant dense<0.000000e+00> : vector<64xf32>
    %175 = vector.multi_reduction <add>, %172, %cst_87 [0] : vector<28x64xf32> to vector<64xf32>
    %176 = vector.shape_cast %175 : vector<64xf32> to vector<1x64xf32>
    %cst_88 = arith.constant 0.0357142873 : f32
    %177 = vector.broadcast %cst_88 : f32 to vector<1x64xf32>
    %178 = arith.mulf %176, %177 : vector<1x64xf32>
    %179 = vector.broadcast %178 : vector<1x64xf32> to vector<28x64xf32>
    %180 = arith.subf %172, %179 : vector<28x64xf32>
    %181 = arith.mulf %180, %180 : vector<28x64xf32>
    %cst_89 = arith.constant dense<0.000000e+00> : vector<64xf32>
    %182 = vector.multi_reduction <add>, %181, %cst_89 [0] : vector<28x64xf32> to vector<64xf32>
    %183 = vector.shape_cast %182 : vector<64xf32> to vector<1x64xf32>
    %cst_90 = arith.constant 0.0357142873 : f32
    %184 = vector.broadcast %cst_90 : f32 to vector<1x64xf32>
    %185 = arith.mulf %183, %184 : vector<1x64xf32>
    %cst_91 = arith.constant 9.99999974E-6 : f32
    %186 = vector.broadcast %cst_91 : f32 to vector<1x64xf32>
    %187 = arith.addf %185, %186 : vector<1x64xf32>
    %188 = math.rsqrt %187 : vector<1x64xf32>
    %189 = arith.mulf %173, %188 : vector<1x64xf32>
    %190 = arith.mulf %178, %189 : vector<1x64xf32>
    %191 = arith.subf %174, %190 : vector<1x64xf32>
    %192 = vector.broadcast %189 : vector<1x64xf32> to vector<28x64xf32>
    %193 = arith.mulf %172, %192 : vector<28x64xf32>
    %194 = vector.broadcast %191 : vector<1x64xf32> to vector<28x64xf32>
    %195 = arith.addf %193, %194 : vector<28x64xf32>
    %cst_92 = arith.constant 0.000000e+00 : f32
    %196 = vector.broadcast %cst_92 : f32 to vector<28x64xf32>
    %197 = arith.maximumf %195, %196 : vector<28x64xf32>
    %198 = vector.extract_strided_slice %197 {offsets = [0, 0], sizes = [14, 64], strides = [1, 1]} : vector<28x64xf32> to vector<14x64xf32>
    %199 = vector.extract_strided_slice %197 {offsets = [14, 0], sizes = [14, 64], strides = [1, 1]} : vector<28x64xf32> to vector<14x64xf32>
    %200 = tpu.concatenate %198, %199 in 1 : vector<14x64xf32>, vector<14x64xf32> -> vector<14x128xf32>
    %c0_93 = arith.constant 0 : index
    %c0_94 = arith.constant 0 : index
    %201 = vector.load %arg5[%c0_93, %c0_94] : memref<14x128xf32, #tpu.memory_space<vmem>>, vector<14x128xf32>
    tpu.vector_store %arg5[%c0_93, %c0_94], %200 {strides = array<i32>} : memref<14x128xf32, #tpu.memory_space<vmem>>, vector<14x128xf32>,
    return
  }
}

</mosaic_0001>

<bundles_post_ra>
// kernel: embedding_function_forward.1
= control target key start
LH: loop header
LB: loop body
LE: loop exit
PB: predicated region body
PF: predicated region fallthrough
CT: control target
= control target key end

     0   :  { %vm108_vm0 = vcmask 1043456   ;;  %vm83_vm1 = vcmask 64512   ;;  %vm211_vm2 = vcmask 523264   ;;  %vm241_vm3 = vcmask 519168   ;;  %s2079_s30 = smov 64   ;;  %s2622_s1 = inlined_call_operand.vmem [shape: bf16[8,64], index: 1, kind: input, shape index: {}]   ;;  %s2623_s0 = inlined_call_operand.vmem [shape: bf16[124,8], index: 0, kind: input, shape index: {}]   ;;  %s2624_s4 = inlined_call_operand.vmem [shape: f32[12,64], index: 4, kind: input, shape index: {}]   ;;  %s2625_s3 = inlined_call_operand.vmem [shape: bf16[3,128,64], index: 3, kind: input, shape index: {}]   ;;  %s2626_s2 = inlined_call_operand.vmem [shape: bf16[3,64,64], index: 2, kind: input, shape index: {}]   ;;  %s2627_s5 = inlined_call_operand.vmem [shape: f32[14,128], index: 5, kind: output, shape index: {}]  }
   0x1   :  { %v37_v0 = vld [vmem:[%s2622_s1] sm:$0xf]  ;;  %v2028_v3 = vld [vmem:[%s2623_s0 + $0x8] sm:$0xff]   ;;  %v2029_v4 = vld [vmem:[%s2623_s0 + $0x10] sm:$0xff]   ;;  %vm561_vm4 = vcmask 1044480   ;;  %vm866_vm5 = vcmask 517120  }
   0x2   :  { %1985 = vmatprep.subr.msk.bf16.mxu0 %vm108_vm0, %v37_v0  ;;  %v110_v1 = vsel %vm108_vm0, %v37_v0, 0  ;;  %v2027_v2 = vld [vmem:[%s2623_s0] sm:$0xff]   ;;  %v2030_v5 = vld [vmem:[%s2623_s0 + $0x18] sm:$0xff]   ;;  %v2032_v7 = vld [vmem:[%s2623_s0 + $0x28] sm:$0xff]   ;;  %vm974_vm6 = vcmask 1046528   ;;  %vm967_vm7 = vcmask 1040384  }
   0x3   :  { %1848 = vmatpush3.bf16.msra.mxu0 %v110_v1  ;;  %1849 = vmatprep.mubr.msk.bf16.mxu0 %vm83_vm1, %v2027_v2  ;;  %v2031_v6 = vld [vmem:[%s2623_s0 + $0x20] sm:$0xff]   ;;  %v2033_v8 = vld [vmem:[%s2623_s0 + $0x30] sm:$0xff]   ;;  %v2034_v9 = vld [vmem:[%s2623_s0 + $0x38] sm:$0x3f]   ;;  %vm1021_vm8 = vcmask 1045504   ;;  %vm1340_vm9 = vcmask 1042432  }
   0x4   :  { %v2148_v10 = vld [vmem:[%s2624_s4] ss:$0 sm:$0xff]  ;;  %v2036_v57 = vld [vmem:[%s2625_s3 + $0x8] sm:$0xff]   ;;  %vm1654_vm10 = vcmask 1041408  }
   0x5   :  { %v2035_v55 = vld [vmem:[%s2625_s3] sm:$0xff]  }
   0x6   :  { %1850 = vmatmul.mubr.msk.bf16.vlgmr.msra.gmra.mrb[0].mxu0 %vm83_vm1, %v2028_v3  ;;  %1865 = vmatprep.subr.bf16.mxu1 %v2035_v55  ;;  %v2037_v3 = vld [vmem:[%s2625_s3 + $0x10] sm:$0xff]  }
   0x7   :  { %1853 = vmatprep.mubr.msk.bf16.mxu0 %vm83_vm1, %v2029_v4  ;;  %1866 = vmatpush3.bf16.msra.mxu1 %v2035_v55 }
   0x8   :  { %1867 = vmatprep.subr.bf16.mxu1 %v2036_v57 }
   0xb   :  { %1868 = vmatpush3.bf16.msra.mxu1 %v2036_v57 }
   0xc   :  { %1869 = vmatprep.subr.bf16.mxu1 %v2037_v3 }
   0xe   :  { %1854 = vmatmul.mubr.msk.bf16.gmra.mrb[4].mxu0 %vm83_vm1, %v2030_v5 }
   0xf   :  { %1857 = vmatprep.mubr.msk.bf16.mxu0 %vm83_vm1, %v2031_v6  ;;  %1870 = vmatpush3.bf16.msra.mxu1 %v2037_v3 }
  0x16   :  { %1858 = vmatmul.mubr.msk.bf16.gmra.mrb[8].mxu0 %vm83_vm1, %v2032_v7 }
  0x17   :  { %1861 = vmatprep.mubr.msk.bf16.mxu0 %vm83_vm1, %v2033_v8  ;;  %v2038_v8 = vld [vmem:[%s2625_s3 + $0x18] sm:$0xff]  }
  0x18   :  { %1871 = vmatprep.subr.bf16.mxu1 %v2038_v8 }
  0x19   :  { %1872 = vmatpush3.bf16.msra.mxu1 %v2038_v8 }
  0x1e   :  { %1862 = vmatmul.mubr.msk.bf16.gmra.mrb[12].mxu0 %vm83_vm1, %v2034_v9 }
  0xd9   :  { %v1851_v11 = vpop.f32.mrb[0].mxu0 }
  0xda   :  { %v146_v12 = vpop.f32.mrb[1].mxu0  ;;  %v2154_v16 = vadd.f32 %v1851_v11, %v2148_v10 }
  0xdb   :  { %v2151_v13 = vadd.f32 %v2148_v10, %v146_v12  ;;  %v1852_v14 = vpop.f32.mrb[2].mxu0 }
  0xdc   :  { %v149_v15 = vpop.f32.mrb[3].mxu0  ;;  %v2162_v19 = vadd.f32 %v1852_v14, %v2148_v10  ;;  %v215_v22 = vsel %vm211_vm2, %v2154_v16, 0.0 }
  0xdd   :  { %v2157_v17 = vadd.f32 %v2148_v10, %v149_v15  ;;  %v212_v18 = vsel %vm211_vm2, %v2151_v13, 0.0 }
  0xde   :  { %v217_v26 = vsel %vm211_vm2, %v2162_v19, 0.0 }
  0xdf   :  { %v213_v20 = vsel %vm211_vm2, %v2157_v17, 0.0 }
  0xe0   :  { %v214_v21 = vadd.f32 %v213_v20, %v212_v18  ;;  %v2040_v20 = vld [vmem:[%s2625_s3 + $0x28] sm:$0xff]  }
  0xe1   :  { %v1855_v23 = vpop.f32.mrb[4].mxu0 }
  0xe2   :  { %v216_v24 = vadd.f32 %v215_v22, %v214_v21  ;;  %v162_v25 = vpop.f32.mrb[5].mxu0  ;;  %v2174_v31 = vadd.f32 %v1855_v23, %v2148_v10 }
  0xe3   :  { %v2171_v27 = vadd.f32 %v2148_v10, %v162_v25  ;;  %v1856_v28 = vpop.f32.mrb[6].mxu0 }
  0xe4   :  { %v218_v29 = vadd.f32 %v217_v26, %v216_v24  ;;  %v165_v30 = vpop.f32.mrb[7].mxu0  ;;  %v2182_v35 = vadd.f32 %v1856_v28, %v2148_v10  ;;  %v223_v38 = vsel %vm211_vm2, %v2174_v31, 0.0 }
  0xe5   :  { %v219_v32 = vsel %vm211_vm2, %v2171_v27, 0.0  ;;  %v2179_v33 = vadd.f32 %v2148_v10, %v165_v30 }
  0xe6   :  { %v220_v34 = vadd.f32 %v219_v32, %v218_v29  ;;  %v225_v42 = vsel %vm211_vm2, %v2182_v35, 0.0 }
  0xe7   :  { %v221_v36 = vsel %vm211_vm2, %v2179_v33, 0.0 }
  0xe8   :  { %v222_v37 = vadd.f32 %v221_v36, %v220_v34 }
  0xe9   :  { %v1859_v39 = vpop.f32.mrb[8].mxu0 }
  0xea   :  { %v224_v40 = vadd.f32 %v223_v38, %v222_v37  ;;  %v178_v41 = vpop.f32.mrb[9].mxu0  ;;  %v2194_v45 = vadd.f32 %v1859_v39, %v2148_v10 }
  0xeb   :  { %v2191_v43 = vadd.f32 %v2148_v10, %v178_v41  ;;  %v1860_v44 = vpop.f32.mrb[10].mxu0 }
  0xec   :  { %v226_v46 = vadd.f32 %v225_v42, %v224_v40  ;;  %v181_v47 = vpop.f32.mrb[11].mxu0  ;;  %v2202_v51 = vadd.f32 %v1860_v44, %v2148_v10  ;;  %v231_v53 = vsel %vm211_vm2, %v2194_v45, 0.0 }
  0xed   :  { %v227_v48 = vsel %vm211_vm2, %v2191_v43, 0.0  ;;  %v2199_v49 = vadd.f32 %v2148_v10, %v181_v47 }
  0xee   :  { %v228_v50 = vadd.f32 %v227_v48, %v226_v46  ;;  %v233_v61 = vsel %vm211_vm2, %v2202_v51, 0.0 }
  0xef   :  { %v229_v52 = vsel %vm211_vm2, %v2199_v49, 0.0 }
  0xf0   :  { %v230_v54 = vadd.f32 %v229_v52, %v228_v50 }
  0xf1   :  { %v1863_v56 = vpop.f32.mrb[12].mxu0 }
  0xf2   :  { %v232_v58 = vadd.f32 %v231_v53, %v230_v54  ;;  %v2215_v59 = vadd.f32 %v1863_v56, %v2148_v10  ;;  %v194_v60 = vpop.f32.mrb[13].mxu0 }
  0xf3   :  { %v2220_v62 = vadd.f32 %v2148_v10, %v194_v60  ;;  %v1864_v63 = vpop.f32.mrb[14].mxu0 }
  0xf4   :  { %v234_v0 = vadd.f32 %v233_v61, %v232_v58  ;;  %v2223_v1 = vadd.f32 %v1864_v63, %v2148_v10  ;;  %v197_v2 = vpop.f32.mrb[15].mxu0  ;;  %v239_v6 = vsel %vm211_vm2, %v2215_v59, 0.0 }
  0xf5   :  { %v235_v4 = vsel %vm211_vm2, %v2220_v62, 0.0  ;;  %v2231_v5 = vadd.f32 %v2148_v10, %v197_v2  ;;  %v2039_v10 = vld [vmem:[%s2625_s3 + $0x20] sm:$0xff]  }
  0xf6   :  { %v236_v7 = vadd.f32 %v235_v4, %v234_v0  ;;  %v242_v9 = vsel %vm241_vm3, %v2223_v1, 0.0  ;;  %1873 = vmatprep.subr.bf16.mxu1 %v2039_v10 }
  0xf7   :  { %v237_v11 = vsel %vm211_vm2, %v2231_v5, 0.0  ;;  %1874 = vmatpush3.bf16.msra.mxu1 %v2039_v10 }
  0xf8   :  { %v238_v12 = vadd.f32 %v237_v11, %v236_v7  ;;  %1875 = vmatprep.subr.bf16.mxu1 %v2040_v20 }
  0xfa   :  { %v240_v14 = vadd.f32 %v239_v6, %v238_v12 }
  0xfb   :  { %1876 = vmatpush3.bf16.msra.mxu1 %v2040_v20 }
  0xfc   :  { %v243_v15 = vadd.f32 %v242_v9, %v240_v14 }
  0xfe   :  { %v244_v18 = vrot.slane %v243_v15, 4 }
 0x100   :  { %v245_v21 = vadd.f32 %v244_v18, %v243_v15 }
 0x102   :  { %v246_v22 = vrot.slane %v245_v21, 2 }
 0x104   :  { %v247_v23 = vadd.f32 %v246_v22, %v245_v21 }
 0x106   :  { %v248_v24 = vrot.slane %v247_v23, 1 }
 0x108   :  { %v249_v25 = vadd.f32 %v248_v24, %v247_v23 }
 0x10a   :  { %v2248_v26 = vmul.f32 0.008064516, %v249_v25 }
 0x10c   :  { %v251_v28 = vsub.f32 %v2151_v13, %v2248_v26  ;;  %v252_v29 = vsub.f32 %v2157_v17, %v2248_v26  ;;  %v253_v30 = vsub.f32 %v2154_v16, %v2248_v26  ;;  %v254_v32 = vsub.f32 %v2162_v19, %v2248_v26 }
 0x10d   :  { %v255_v37 = vsub.f32 %v2171_v27, %v2248_v26  ;;  %v256_v39 = vsub.f32 %v2179_v33, %v2248_v26  ;;  %v257_v46 = vsub.f32 %v2174_v31, %v2248_v26  ;;  %v258_v52 = vsub.f32 %v2182_v35, %v2248_v26 }
 0x10e   :  { %v267_v34 = vmul.f32 %v251_v28, %v251_v28  ;;  %v268_v36 = vmul.f32 %v252_v29, %v252_v29  ;;  %v269_v38 = vmul.f32 %v253_v30, %v253_v30  ;;  %v270_v40 = vmul.f32 %v254_v32, %v254_v32 }
 0x10f   :  { %v271_v47 = vmul.f32 %v255_v37, %v255_v37  ;;  %v272_v53 = vmul.f32 %v256_v39, %v256_v39  ;;  %v259_v56 = vsub.f32 %v2191_v43, %v2248_v26  ;;  %v273_v57 = vmul.f32 %v257_v46, %v257_v46 }
 0x110   :  { %v283_v41 = vsel %vm211_vm2, %v267_v34, 0.0  ;;  %v284_v42 = vsel %vm211_vm2, %v268_v36, 0.0  ;;  %v286_v48 = vsel %vm211_vm2, %v269_v38, 0.0  ;;  %v288_v54 = vsel %vm211_vm2, %v270_v40, 0.0 }
 0x111   :  { %v285_v44 = vadd.f32 %v284_v42, %v283_v41  ;;  %v290_v58 = vsel %vm211_vm2, %v271_v47, 0.0  ;;  %v260_v61 = vsub.f32 %v2199_v49, %v2248_v26  ;;  %v274_v63 = vmul.f32 %v258_v52, %v258_v52 }
 0x112   :  { %v292_v0 = vsel %vm211_vm2, %v272_v53, 0.0  ;;  %v261_v3 = vsub.f32 %v2194_v45, %v2248_v26  ;;  %v275_v4 = vmul.f32 %v259_v56, %v259_v56  ;;  %v294_v6 = vsel %vm211_vm2, %v273_v57, 0.0 }
 0x113   :  { %v287_v50 = vadd.f32 %v286_v48, %v285_v44  ;;  %v262_v8 = vsub.f32 %v2202_v51, %v2248_v26  ;;  %v276_v9 = vmul.f32 %v260_v61, %v260_v61  ;;  %v296_v11 = vsel %vm211_vm2, %v274_v63, 0.0  ;;  %v209_v63 = vld [vmem:[%s2624_s4 + $0x1] sm:$0x1] }
 0x114   :  { %v263_v14 = vsub.f32 %v2220_v62, %v2248_v26  ;;  %v277_v10 = vmul.f32 %v261_v3, %v261_v3  ;;  %v298_v15 = vsel %vm211_vm2, %v275_v4, 0.0  ;;  %v264_v20 = vsub.f32 %v2231_v5, %v2248_v26  ;;  %v210_v4 = vld [vmem:[%s2624_s4 + $0x2] sm:$0x1] }
 0x115   :  { %v289_v55 = vadd.f32 %v288_v54, %v287_v50  ;;  %v278_v21 = vmul.f32 %v262_v8, %v262_v8  ;;  %v300_v22 = vsel %vm211_vm2, %v276_v9, 0.0  ;;  %v265_v24 = vsub.f32 %v2215_v59, %v2248_v26 }
 0x116   :  { %v279_v25 = vmul.f32 %v263_v14, %v263_v14  ;;  %v302_v28 = vsel %vm211_vm2, %v277_v10, 0.0  ;;  %v266_v30 = vsub.f32 %v2223_v1, %v2248_v26  ;;  %v280_v32 = vmul.f32 %v264_v20, %v264_v20 }
 0x117   :  { %v291_v60 = vadd.f32 %v290_v58, %v289_v55  ;;  %v304_v34 = vsel %vm211_vm2, %v278_v21, 0.0  ;;  %v281_v37 = vmul.f32 %v265_v24, %v265_v24 }
 0x118   :  { %v306_v38 = vsel %vm211_vm2, %v279_v25, 0.0  ;;  %v282_v40 = vmul.f32 %v266_v30, %v266_v30  ;;  %v308_v41 = vsel %vm211_vm2, %v280_v32, 0.0 }
 0x119   :  { %v293_v2 = vadd.f32 %v292_v0, %v291_v60  ;;  %v310_v44 = vsel %vm211_vm2, %v281_v37, 0.0  ;;  %v326_v60 = vlaneseq }
 0x11a   :  { %v312_v47 = vsel %vm241_vm3, %v282_v40, 0.0 }
 0x11b   :  { %v295_v7 = vadd.f32 %v294_v6, %v293_v2  ;;  %v327_v61 = vshrl.u32 %v326_v60, 7 }
 0x11d   :  { %v297_v12 = vadd.f32 %v296_v11, %v295_v7  ;;  %v2301_v0 = vsub.s32 0, %v327_v61 }
 0x11f   :  { %v299_v18 = vadd.f32 %v298_v15, %v297_v12 }
 0x121   :  { %v301_v23 = vadd.f32 %v300_v22, %v299_v18 }
 0x123   :  { %v303_v29 = vadd.f32 %v302_v28, %v301_v23 }
 0x125   :  { %v305_v36 = vadd.f32 %v304_v34, %v303_v29 }
 0x127   :  { %v307_v39 = vadd.f32 %v306_v38, %v305_v36 }
 0x129   :  { %v309_v42 = vadd.f32 %v308_v41, %v307_v39 }
 0x12b   :  { %v311_v46 = vadd.f32 %v310_v44, %v309_v42 }
 0x12d   :  { %v313_v48 = vadd.f32 %v312_v47, %v311_v46 }
 0x12f   :  { %v314_v50 = vrot.slane %v313_v48, 4 }
 0x131   :  { %v315_v52 = vadd.f32 %v314_v50, %v313_v48 }
 0x133   :  { %v316_v53 = vrot.slane %v315_v52, 2 }
 0x135   :  { %v317_v54 = vadd.f32 %v316_v53, %v315_v52 }
 0x137   :  { %v318_v55 = vrot.slane %v317_v54, 1 }
 0x139   :  { %v319_v56 = vadd.f32 %v318_v55, %v317_v54 }
 0x13b   :  { %v320_v57 = vmul.f32 0.008064516, %v319_v56  ;;  %v2041_v56 = vld [vmem:[%s2625_s3 + $0x30] sm:$0xff]  }
 0x13c   :  { %1877 = vmatprep.subr.bf16.mxu1 %v2041_v56 }
 0x13d   :  { %v321_v58 = vadd.f32 1e-05, %v320_v57  ;;  %1878 = vmatpush3.bf16.msra.mxu1 %v2041_v56 }
 0x13f   :  { %2071 = vrsqrt.f32 %v321_v58 }
 0x149   :  { %v2072_v2 = vpop.eup %2071 }
 0x14a   :  { %v323_v3 = vmul.f32 %v2072_v2, %v209_v63  ;;  %v2042_v63 = vld [vmem:[%s2625_s3 + $0x38] sm:$0xff]  }
 0x14b   :  { %1879 = vmatprep.subr.bf16.mxu1 %v2042_v63 }
 0x14c   :  { %v324_v6 = vmul.f32 %v323_v3, %v2248_v26  ;;  %v329_v7 = vrot.slane %v323_v3, %v2301_v0  ;;  %1880 = vmatpush3.bf16.msra.mxu1 %v2042_v63 }
 0x14e   :  { %v325_v8 = vsub.f32 %v210_v4, %v324_v6  ;;  %v343_v9 = vmul.f32 %v329_v7, %v2231_v5  ;;  %v334_v11 = vmul.f32 %v329_v7, %v2171_v27  ;;  %v335_v12 = vmul.f32 %v329_v7, %v2179_v33 }
 0x14f   :  { %v336_v14 = vmul.f32 %v329_v7, %v2174_v31  ;;  %v340_v10 = vmul.f32 %v329_v7, %v2194_v45  ;;  %v341_v15 = vmul.f32 %v329_v7, %v2202_v51  ;;  %v342_v18 = vmul.f32 %v329_v7, %v2220_v62 }
 0x150   :  { %v349_v20 = vrot.slane %v325_v8, %v2301_v0  ;;  %v330_v26 = vmul.f32 %v329_v7, %v2151_v13  ;;  %v331_v21 = vmul.f32 %v329_v7, %v2157_v17  ;;  %v332_v5 = vmul.f32 %v329_v7, %v2154_v16 }
 0x151   :  { %v338_v27 = vmul.f32 %v329_v7, %v2191_v43  ;;  %v339_v33 = vmul.f32 %v329_v7, %v2199_v49  ;;  %v344_v31 = vmul.f32 %v329_v7, %v2215_v59  ;;  %v345_v45 = vmul.f32 %v329_v7, %v2223_v1 }
 0x152   :  { %v363_v22 = vadd.f32 %v349_v20, %v343_v9  ;;  %v354_v51 = vadd.f32 %v349_v20, %v334_v11  ;;  %v355_v23 = vadd.f32 %v349_v20, %v335_v12  ;;  %v356_v62 = vadd.f32 %v349_v20, %v336_v14 }
 0x153   :  { %v360_v24 = vadd.f32 %v349_v20, %v340_v10  ;;  %v361_v25 = vadd.f32 %v349_v20, %v341_v15  ;;  %v362_v28 = vadd.f32 %v349_v20, %v342_v18  ;;  %v350_v13 = vadd.f32 %v349_v20, %v330_v26 }
 0x154   :  { %v379_v29 = vmax.f32 %v363_v22, 0.0  ;;  %v370_v17 = vmax.f32 %v354_v51, 0.0  ;;  %v371_v30 = vmax.f32 %v355_v23, 0.0  ;;  %v372_v16 = vmax.f32 %v356_v62, 0.0  ;;  %v2353_v51 = vld [vmem:[%s2626_s2] sm:$0xff]  }
 0x155   :  { %v376_v32 = vmax.f32 %v360_v24, 0.0  ;;  %v377_v43 = vmax.f32 %v361_v25, 0.0  ;;  %v378_v34 = vmax.f32 %v362_v28, 0.0  ;;  %v351_v49 = vadd.f32 %v349_v20, %v331_v21  ;;  %1889 = vmatprep.subr.bf16.mxu1 %v2353_v51 }
 0x156   :  { %395 = vst.msk [vmem:[#allocation2 + $0x68] sm:$0xff] %vm211_vm2, %v379_v29  ;;  %386 = vst.msk [vmem:[#allocation2 + $0x20] sm:$0xff] %vm211_vm2, %v370_v17  ;;  %v352_v59 = vadd.f32 %v349_v20, %v332_v5  ;;  %v358_v1 = vadd.f32 %v349_v20, %v338_v27  ;;  %v359_v36 = vadd.f32 %v349_v20, %v339_v33  ;;  %v366_v37 = vmax.f32 %v350_v13, 0.0 }
 0x157   :  { %387 = vst.msk [vmem:[#allocation2 + $0x28] sm:$0xff] %vm211_vm2, %v371_v30  ;;  %388 = vst.msk [vmem:[#allocation2 + $0x30] sm:$0xff] %vm211_vm2, %v372_v16  ;;  %v367_v38 = vmax.f32 %v351_v49, 0.0  ;;  %v364_v39 = vadd.f32 %v349_v20, %v344_v31  ;;  %v365_v40 = vadd.f32 %v349_v20, %v345_v45  ;;  %v333_v41 = vmul.f32 %v329_v7, %v2162_v19 }
 0x158   :  { %392 = vst.msk [vmem:[#allocation2 + $0x50] sm:$0xff] %vm211_vm2, %v376_v32  ;;  %393 = vst.msk [vmem:[#allocation2 + $0x58] sm:$0xff] %vm211_vm2, %v377_v43  ;;  %v368_v42 = vmax.f32 %v352_v59, 0.0  ;;  %v374_v44 = vmax.f32 %v358_v1, 0.0  ;;  %v375_v46 = vmax.f32 %v359_v36, 0.0  ;;  %v337_v47 = vmul.f32 %v329_v7, %v2182_v35 }
 0x159   :  { %394 = vst.msk [vmem:[#allocation2 + $0x60] sm:$0xff] %vm211_vm2, %v378_v34  ;;  %382 = vst.msk [vmem:[#allocation2] sm:$0xff] %vm211_vm2, %v366_v37  ;;  %v380_v48 = vmax.f32 %v364_v39, 0.0  ;;  %v381_v50 = vmax.f32 %v365_v40, 0.0  ;;  %v353_v52 = vadd.f32 %v349_v20, %v333_v41 }
 0x15a   :  { %383 = vst.msk [vmem:[#allocation2 + $0x8] sm:$0xff] %vm211_vm2, %v367_v38  ;;  %384 = vst.msk [vmem:[#allocation2 + $0x10] sm:$0xff] %vm211_vm2, %v368_v42  ;;  %v357_v53 = vadd.f32 %v349_v20, %v337_v47 }
 0x15b   :  { %390 = vst.msk [vmem:[#allocation2 + $0x40] sm:$0xff] %vm211_vm2, %v374_v44  ;;  %391 = vst.msk [vmem:[#allocation2 + $0x48] sm:$0xff] %vm211_vm2, %v375_v46  ;;  %v369_v19 = vmax.f32 %v353_v52, 0.0 }
 0x15c   :  { %396 = vst.msk [vmem:[#allocation2 + $0x70] sm:$0xff] %vm211_vm2, %v380_v48  ;;  %v373_v54 = vmax.f32 %v357_v53, 0.0 }
 0x15d   :  { %397 = vst.msk [vmem:[#allocation2 + $0x78] sm:$0xf] %vm241_vm3, %v381_v50 }
 0x15e   :  { %v442_v55 = vld [vmem:[#allocation2 + $0x24] ss:$2 sm:$0xff]  ;;  %v450_v35 = vld [vmem:[#allocation2 + $0x25] ss:$2 sm:$0xff]  ;;  %385 = vst.msk [vmem:[#allocation2 + $0x18] sm:$0xff] %vm211_vm2, %v369_v19  ;;  %389 = vst.msk [vmem:[#allocation2 + $0x38] sm:$0xff] %vm211_vm2, %v373_v54 }
 0x15f   :  { %v455_v57 = vmax.f32 %v442_v55, %v450_v35  ;;  %v402_v19 = vld [vmem:[#allocation2 + $0x20] ss:$2 sm:$0xff]  ;;  %v410_v54 = vld [vmem:[#allocation2 + $0x21] ss:$2 sm:$0xff] }
 0x160   :  { %v520_v58 = vld [vmem:[#allocation2 + $0x52] ss:$2 sm:$0xff]  ;;  %v528_v60 = vld [vmem:[#allocation2 + $0x53] ss:$2 sm:$0xff] }
 0x161   :  { %v534_v61 = vmax.f32 %v520_v58, %v528_v60  ;;  %v438_v3 = vld [vmem:[#allocation2 + $0x4] ss:$2 sm:$0xff]  ;;  %v446_v4 = vld [vmem:[#allocation2 + $0x5] ss:$2 sm:$0xff] }
 0x162   :  { %v518_v6 = vld [vmem:[#allocation2 + $0x42] ss:$2 sm:$0xff]  ;;  %v453_v7 = vmax.f32 %v438_v3, %v446_v4  ;;  %v526_v8 = vld [vmem:[#allocation2 + $0x43] ss:$2 sm:$0xff]  ;;  %v415_v4 = vmax.f32 %v402_v19, %v410_v54 }
 0x163   :  { %v1997_v2 = vpack.i.bf16 %v534_v61, %v455_v57  ;;  %v522_v9 = vld [vmem:[#allocation2 + $0x62] ss:$2 sm:$0xff]  ;;  %v530_v11 = vld [vmem:[#allocation2 + $0x63] ss:$2 sm:$0xff]  ;;  %v533_v12 = vmax.f32 %v518_v6, %v526_v8 }
 0x164   :  { %v524_v14 = vld [vmem:[#allocation2 + $0x72] ss:$2 sm:$0x1f]  ;;  %v532_v10 = vld [vmem:[#allocation2 + $0x73] ss:$2 sm:$0x1f]  ;;  %v535_v15 = vmax.f32 %v522_v9, %v530_v11 }
 0x165   :  { %1998 = vrot.lane.b32.xlu1 %v1997_v2, %s2079_s30  ;;  %v536_v18 = vmax.f32 %v524_v14, %v532_v10  ;;  %v440_v20 = vld [vmem:[#allocation2 + $0x14] ss:$2 sm:$0xff]  ;;  %v448_v26 = vld [vmem:[#allocation2 + $0x15] ss:$2 sm:$0xff]  ;;  %v1987_v21 = vpack.i.bf16 %v453_v7, %v533_v12 }
 0x166   :  { %v444_v5 = vld [vmem:[#allocation2 + $0x34] ss:$2 sm:$0x1f]  ;;  %v452_v27 = vld [vmem:[#allocation2 + $0x35] ss:$2 sm:$0x1f]  ;;  %v454_v33 = vmax.f32 %v440_v20, %v448_v26 }
 0x167   :  { %v2002_v31 = vpack.i.bf16 %v536_v18, %v535_v15  ;;  %v456_v45 = vmax.f32 %v444_v5, %v452_v27  ;;  %1988 = vrot.lane.b32.xlu0 %v1987_v21, %s2079_s30  ;;  %v480_v23 = vld [vmem:[#allocation2 + $0x4e] ss:$2 sm:$0xff]  ;;  %v488_v62 = vld [vmem:[#allocation2 + $0x4f] ss:$2 sm:$0xff]  ;;  %v478_v13 = vld [vmem:[#allocation2 + $0x3e] ss:$2 sm:$0xff] }
 0x168   :  { %v494_v28 = vmax.f32 %v480_v23, %v488_v62  ;;  %v486_v29 = vld [vmem:[#allocation2 + $0x3f] ss:$2 sm:$0xff]  ;;  %v482_v17 = vld [vmem:[#allocation2 + $0x5e] ss:$2 sm:$0xff] }
 0x169   :  { %2003 = vrot.lane.b32.xlu1 %v2002_v31, %s2079_s30  ;;  %v1992_v22 = vpack.i.bf16 %v456_v45, %v454_v33  ;;  %v490_v30 = vld [vmem:[#allocation2 + $0x5f] ss:$2 sm:$0xff]  ;;  %v398_v16 = vld [vmem:[#allocation2] ss:$2 sm:$0xff]  ;;  %v493_v1 = vmax.f32 %v478_v13, %v486_v29  ;;  %v400_v46 = vld [vmem:[#allocation2 + $0x10] ss:$2 sm:$0xff] }
 0x16a   :  { %v406_v32 = vld [vmem:[#allocation2 + $0x1] ss:$2 sm:$0xff]  ;;  %v404_v49 = vld [vmem:[#allocation2 + $0x30] ss:$2 sm:$0x1f]  ;;  %v495_v41 = vmax.f32 %v482_v17, %v490_v30 }
 0x16b   :  { %1993 = vrot.lane.b32.xlu0 %v1992_v22, %s2079_s30  ;;  %v412_v59 = vld [vmem:[#allocation2 + $0x31] ss:$2 sm:$0x1f]  ;;  %v484_v38 = vld [vmem:[#allocation2 + $0x6e] ss:$2 sm:$0x1f]  ;;  %v413_v53 = vmax.f32 %v398_v16, %v406_v32 }
 0x16c   :  { %v492_v39 = vld [vmem:[#allocation2 + $0x6f] ss:$2 sm:$0x1f]  ;;  %v416_v52 = vmax.f32 %v404_v49, %v412_v59  ;;  %v418_v26 = vld [vmem:[#allocation2 + $0x2] ss:$2 sm:$0xff] }
 0x16d   :  { %v408_v47 = vld [vmem:[#allocation2 + $0x11] ss:$2 sm:$0xff]  ;;  %v496_v58 = vmax.f32 %v484_v38, %v492_v39  ;;  %v2044_v20 = vld [vmem:[%s2626_s2 + $0x8] sm:$0xff]   ;;  %v420_v21 = vld [vmem:[#allocation2 + $0x12] ss:$2 sm:$0xff] }
 0x16e   :  { %v414_v2 = vmax.f32 %v400_v46, %v408_v47  ;;  %v426_v27 = vld [vmem:[#allocation2 + $0x3] ss:$2 sm:$0xff]  ;;  %v428_v33 = vld [vmem:[#allocation2 + $0x13] ss:$2 sm:$0xff]  ;;  %v498_v31 = vld [vmem:[#allocation2 + $0x40] ss:$2 sm:$0xff] }
 0x16f   :  { %v506_v45 = vld [vmem:[#allocation2 + $0x41] ss:$2 sm:$0xff]  ;;  %v500_v22 = vld [vmem:[#allocation2 + $0x50] ss:$2 sm:$0xff]  ;;  %v502_v23 = vld [vmem:[#allocation2 + $0x60] ss:$2 sm:$0xff]  ;;  %v433_v13 = vmax.f32 %v418_v26, %v426_v27  ;;  %v434_v29 = vmax.f32 %v420_v21, %v428_v33 }
 0x170   :  { %v508_v62 = vld [vmem:[#allocation2 + $0x51] ss:$2 sm:$0xff]  ;;  %v513_v17 = vmax.f32 %v498_v31, %v506_v45  ;;  %v422_v39 = vld [vmem:[#allocation2 + $0x22] ss:$2 sm:$0xff] }
 0x171   :  { %v514_v30 = vmax.f32 %v500_v22, %v508_v62  ;;  %v593_v49 = vpack.c.bf16 %v434_v29, %v433_v13  ;;  %v512_v38 = vld [vmem:[#allocation2 + $0x71] ss:$2 sm:$0x1f] }
 0x172   :  { %v562_v59 = vrot.slane %v513_v17, 3 }
 0x1d7   :  { %v1999_v24 = vpop.permute.xlu1 %1998 }
 0x1d8   :  { %v2001_v25 = vunpack.i.h.bf16 %v1999_v24  ;;  %v2000_v55 = vunpack.i.l.bf16 %v1999_v24  ;;  %v510_v24 = vld [vmem:[#allocation2 + $0x61] ss:$2 sm:$0xff] }
 0x1d9   :  { %v1989_v34 = vpop.permute.xlu0 %1988  ;;  %v515_v16 = vmax.f32 %v502_v23, %v510_v24 }
 0x1da   :  { %v554_v43 = vsel %vm211_vm2, %v494_v28, %v2001_v25  ;;  %v1990_v36 = vunpack.i.l.bf16 %v1989_v34  ;;  %v1991_v40 = vunpack.i.h.bf16 %v1989_v34  ;;  %v475_v14 = vsel %vm211_vm2, %v415_v4, %v2000_v55  ;;  %v2045_v25 = vld [vmem:[%s2626_s2 + $0x10] sm:$0xff]   ;;  %v2047_v55 = vld [vmem:[%s2625_s3 + $0x40] sm:$0xff]  }
 0x1db   :  { %v2004_v37 = vpop.permute.xlu1 %2003  ;;  %v580_v48 = vrot.slane %v554_v43, 3  ;;  %v424_v43 = vld [vmem:[#allocation2 + $0x32] ss:$2 sm:$0x1f]  ;;  %1905 = vmatprep.subr.bf16.mxu0 %v2047_v55 }
 0x1dc   :  { %v2006_v42 = vunpack.i.h.bf16 %v2004_v37  ;;  %v2005_v44 = vunpack.i.l.bf16 %v2004_v37  ;;  %v553_v50 = vsel %vm211_vm2, %v493_v1, %v1990_v36  ;;  %v473_v3 = vsel %vm211_vm2, %v413_v53, %v1991_v40  ;;  %v432_v34 = vld [vmem:[#allocation2 + $0x33] ss:$2 sm:$0x1f]  ;;  %v504_v1 = vld [vmem:[#allocation2 + $0x70] ss:$2 sm:$0x1f]  ;;  %1906 = vmatpush3.bf16.msra.mxu0 %v2047_v55 }
 0x1dd   :  { %v579_v35 = vrot.slane %v553_v50, 3  ;;  %v1994_v57 = vpop.permute.xlu0 %1993  ;;  %v563_v36 = vrot.slane %v514_v30, 3  ;;  %v565_v37 = vrot.slane %v515_v16, 3  ;;  %v430_v40 = vld [vmem:[#allocation2 + $0x23] ss:$2 sm:$0xff] }
 0x1de   :  { %v555_v56 = vsel %vm211_vm2, %v495_v41, %v2005_v44  ;;  %v1996_v61 = vunpack.i.h.bf16 %v1994_v57  ;;  %v1995_v63 = vunpack.i.l.bf16 %v1994_v57  ;;  %v556_v6 = vsel %vm211_vm2, %v496_v58, %v2006_v42  ;;  %v2050_v57 = vld [vmem:[%s2625_s3 + $0x58] sm:$0xff]   ;;  %v2051_v58 = vld [vmem:[%s2625_s3 + $0x60] sm:$0xff]  }
 0x1df   :  { %v582_v60 = vrot.slane %v555_v56, 3  ;;  %v581_v9 = vsel %vm561_vm4, %v579_v35, %v580_v48  ;;  %v584_v5 = vrot.slane %v556_v6, 3  ;;  %v436_v41 = vmax.f32 %v424_v43, %v432_v34  ;;  %v2049_v56 = vld [vmem:[%s2625_s3 + $0x50] sm:$0xff]  }
 0x1e0   :  { %v476_v7 = vsel %vm211_vm2, %v416_v52, %v1996_v61  ;;  %v474_v8 = vsel %vm211_vm2, %v414_v2, %v1995_v63  ;;  %v516_v44 = vmax.f32 %v504_v1, %v512_v38  ;;  %v435_v46 = vmax.f32 %v422_v39, %v430_v40  ;;  %v2052_v61 = vld [vmem:[%s2625_s3 + $0x68] sm:$0xff]  }
 0x1e1   :  { %v583_v11 = vsel %vm561_vm4, %v580_v48, %v582_v60  ;;  %v605_v12 = vpack.c.bf16 %v474_v8, %v473_v3  ;;  %v591_v10 = vsel %vm561_vm4, %v476_v7, %v579_v35  ;;  %v585_v28 = vsel %vm561_vm4, %v582_v60, %v584_v5  ;;  %v2048_v35 = vld [vmem:[%s2625_s3 + $0x48] sm:$0xff]   ;;  %v1707_v60 = vld [vmem:[%s2624_s4 + $0x3] ss:$0 sm:$0xff] }
 0x1e2   :  { %v607_v15 = vpack.c.bf16 %v583_v11, %v581_v9  ;;  %v606_v18 = vpack.c.bf16 %v591_v10, %v475_v14  ;;  %v608_v32 = vpack.c.bf16 %v584_v5, %v585_v28  ;;  %v574_v42 = vsel %vm561_vm4, %v436_v41, %v562_v59  ;;  %1907 = vmatprep.subr.bf16.mxu0 %v2048_v35 }
 0x1e3   :  { %1881 = vmatprep.mubr.bf16.mxu1 %v605_v12  ;;  %v564_v47 = vsel %vm561_vm4, %v562_v59, %v563_v36  ;;  %v566_v48 = vsel %vm561_vm4, %v563_v36, %v565_v37  ;;  %v594_v50 = vpack.c.bf16 %v574_v42, %v435_v46  ;;  %v567_v53 = vrot.slane %v516_v44, 3  ;;  %1908 = vmatpush3.bf16.msra.mxu0 %v2048_v35 }
 0x1e4   :  { %1882 = vmatmul.mubr.bf16.vlgmr.msra.gmra.mrb[0].mxu1 %v606_v18  ;;  %v595_v52 = vpack.c.bf16 %v566_v48, %v564_v47  ;;  %1909 = vmatprep.subr.bf16.mxu0 %v2049_v56 }
 0x1e5   :  { %1890 = vmatpush3.bf16.msra.mxu1 %v2353_v51  ;;  %1885 = vmatprep.mubr.bf16.mxu1 %v607_v15  ;;  %v2046_v51 = vld [vmem:[%s2626_s2 + $0x18] sm:$0xff]   ;;  %v568_v19 = vsel %vm561_vm4, %v565_v37, %v567_v53 }
 0x1e6   :  { %1891 = vmatprep.subr.bf16.mxu1 %v2044_v20  ;;  %v596_v54 = vpack.c.bf16 %v567_v53, %v568_v19 }
 0x1e7   :  { %1910 = vmatpush3.bf16.msra.mxu0 %v2049_v56 }
 0x1e8   :  { %1911 = vmatprep.subr.bf16.mxu0 %v2050_v57 }
 0x1e9   :  { %1892 = vmatpush3.bf16.msra.mxu1 %v2044_v20 }
 0x1ea   :  { %1893 = vmatprep.subr.bf16.mxu1 %v2045_v25 }
 0x1eb   :  { %1912 = vmatpush3.bf16.msra.mxu0 %v2050_v57 }
 0x1ec   :  { %1886 = vmatmul.mubr.bf16.gmra.mrb[4].mxu1 %v608_v32  ;;  %1913 = vmatprep.subr.bf16.mxu0 %v2051_v58 }
 0x1ed   :  { %1894 = vmatpush3.bf16.msra.mxu1 %v2045_v25  ;;  %1897 = vmatprep.mubr.msk.bf16.mxu1 %vm211_vm2, %v593_v49 }
 0x1ee   :  { %1895 = vmatprep.subr.bf16.mxu1 %v2046_v51 }
 0x1ef   :  { %1914 = vmatpush3.bf16.msra.mxu0 %v2051_v58 }
 0x1f0   :  { %1915 = vmatprep.subr.bf16.mxu0 %v2052_v61 }
 0x1f1   :  { %1896 = vmatpush3.bf16.msra.mxu1 %v2046_v51 }
 0x1f3   :  { %1916 = vmatpush3.bf16.msra.mxu0 %v2052_v61 }
 0x1f4   :  { %1898 = vmatmul.mubr.msk.bf16.vlgmr.msra.gmra.mrb[0].mxu1 %vm211_vm2, %v594_v50 }
 0x1f5   :  { %1901 = vmatprep.mubr.msk.bf16.mxu1 %vm211_vm2, %v595_v52 }
 0x1fc   :  { %1902 = vmatmul.mubr.msk.bf16.gmra.mrb[4].mxu1 %vm211_vm2, %v596_v54 }
 0x2c7   :  { %v1899_v63 = vpop.f32.mrb[0].mxu1 }
 0x2c8   :  { %v808_v2 = vpop.f32.mrb[1].mxu1  ;;  %v2410_v7 = vadd.f32 %v1899_v63, %v1707_v60 }
 0x2c9   :  { %v2408_v3 = vadd.f32 %v1707_v60, %v808_v2  ;;  %v1900_v4 = vpop.f32.mrb[2].mxu1 }
 0x2ca   :  { %v811_v6 = vpop.f32.mrb[3].mxu1  ;;  %v2416_v11 = vadd.f32 %v1900_v4, %v1707_v60  ;;  %v856_v10 = vsel %vm211_vm2, %v2410_v7, 0.0 }
 0x2cb   :  { %v2412_v8 = vadd.f32 %v1707_v60, %v811_v6  ;;  %v853_v9 = vsel %vm211_vm2, %v2408_v3, 0.0 }
 0x2cc   :  { %v858_v26 = vsel %vm211_vm2, %v2416_v11, 0.0 }
 0x2cd   :  { %v854_v12 = vsel %vm211_vm2, %v2412_v8, 0.0 }
 0x2ce   :  { %v855_v14 = vadd.f32 %v854_v12, %v853_v9 }
 0x2cf   :  { %v1903_v15 = vpop.f32.mrb[4].mxu1 }
 0x2d0   :  { %v857_v18 = vadd.f32 %v856_v10, %v855_v14  ;;  %v824_v20 = vpop.f32.mrb[5].mxu1  ;;  %v2426_v31 = vadd.f32 %v1903_v15, %v1707_v60 }
 0x2d1   :  { %v2424_v21 = vadd.f32 %v1707_v60, %v824_v20  ;;  %v1904_v5 = vpop.f32.mrb[6].mxu1 }
 0x2d2   :  { %v859_v27 = vadd.f32 %v858_v26, %v857_v18  ;;  %v827_v33 = vpop.f32.mrb[7].mxu1  ;;  %v2432_v62 = vadd.f32 %v1904_v5, %v1707_v60  ;;  %v864_v28 = vsel %vm211_vm2, %v2426_v31, 0.0 }
 0x2d3   :  { %v860_v45 = vsel %vm211_vm2, %v2424_v21, 0.0  ;;  %v2430_v22 = vadd.f32 %v1707_v60, %v827_v33  ;;  %v851_v33 = vld [vmem:[%s2624_s4 + $0x4] sm:$0x1] }
 0x2d4   :  { %v861_v23 = vadd.f32 %v860_v45, %v859_v27  ;;  %v867_v29 = vsel %vm866_vm5, %v2432_v62, 0.0 }
 0x2d5   :  { %v862_v24 = vsel %vm211_vm2, %v2430_v22, 0.0 }
 0x2d6   :  { %v863_v25 = vadd.f32 %v862_v24, %v861_v23  ;;  %v852_v24 = vld [vmem:[%s2624_s4 + $0x5] sm:$0x1] }
 0x2d8   :  { %v865_v13 = vadd.f32 %v864_v28, %v863_v25 }
 0x2da   :  { %v868_v17 = vadd.f32 %v867_v29, %v865_v13 }
 0x2dc   :  { %v869_v30 = vrot.slane %v868_v17, 4 }
 0x2de   :  { %v870_v16 = vadd.f32 %v869_v30, %v868_v17 }
 0x2e0   :  { %v871_v51 = vrot.slane %v870_v16, 2 }
 0x2e2   :  { %v872_v32 = vadd.f32 %v871_v51, %v870_v16 }
 0x2e4   :  { %v873_v43 = vrot.slane %v872_v32, 1 }
 0x2e6   :  { %v874_v34 = vadd.f32 %v873_v43, %v872_v32 }
 0x2e8   :  { %v875_v49 = vmul.f32 0.01724138, %v874_v34 }
 0x2ea   :  { %v876_v59 = vsub.f32 %v2408_v3, %v875_v49  ;;  %v877_v1 = vsub.f32 %v2412_v8, %v875_v49  ;;  %v878_v36 = vsub.f32 %v2410_v7, %v875_v49  ;;  %v879_v37 = vsub.f32 %v2416_v11, %v875_v49 }
 0x2eb   :  { %v880_v38 = vsub.f32 %v2424_v21, %v875_v49  ;;  %v881_v42 = vsub.f32 %v2430_v22, %v875_v49  ;;  %v882_v50 = vsub.f32 %v2426_v31, %v875_v49  ;;  %v883_v54 = vsub.f32 %v2432_v62, %v875_v49 }
 0x2ec   :  { %v884_v39 = vmul.f32 %v876_v59, %v876_v59  ;;  %v885_v40 = vmul.f32 %v877_v1, %v877_v1  ;;  %v886_v41 = vmul.f32 %v878_v36, %v878_v36  ;;  %v887_v44 = vmul.f32 %v879_v37, %v879_v37 }
 0x2ed   :  { %v888_v52 = vmul.f32 %v880_v38, %v880_v38  ;;  %v889_v55 = vmul.f32 %v881_v42, %v881_v42  ;;  %v890_v57 = vmul.f32 %v882_v50, %v882_v50  ;;  %v891_v61 = vmul.f32 %v883_v54, %v883_v54 }
 0x2ee   :  { %v892_v46 = vsel %vm211_vm2, %v884_v39, 0.0  ;;  %v893_v47 = vsel %vm211_vm2, %v885_v40, 0.0  ;;  %v895_v53 = vsel %vm211_vm2, %v886_v41, 0.0  ;;  %v897_v35 = vsel %vm211_vm2, %v887_v44, 0.0 }
 0x2ef   :  { %v894_v48 = vadd.f32 %v893_v47, %v892_v46  ;;  %v899_v58 = vsel %vm211_vm2, %v888_v52, 0.0  ;;  %v901_v63 = vsel %vm211_vm2, %v889_v55, 0.0  ;;  %v903_v4 = vsel %vm211_vm2, %v890_v57, 0.0  ;;  %v2053_v55 = vld [vmem:[%s2625_s3 + $0x70] sm:$0xff]   ;;  %v2054_v57 = vld [vmem:[%s2625_s3 + $0x78] sm:$0xff]  }
 0x2f0   :  { %v905_v9 = vsel %vm866_vm5, %v891_v61, 0.0  ;;  %1917 = vmatprep.subr.bf16.mxu0 %v2053_v55 }
 0x2f1   :  { %v896_v19 = vadd.f32 %v895_v53, %v894_v48  ;;  %1918 = vmatpush3.bf16.msra.mxu0 %v2053_v55 }
 0x2f2   :  { %1919 = vmatprep.subr.bf16.mxu0 %v2054_v57 }
 0x2f3   :  { %v898_v56 = vadd.f32 %v897_v35, %v896_v19 }
 0x2f5   :  { %v900_v60 = vadd.f32 %v899_v58, %v898_v56  ;;  %1920 = vmatpush3.bf16.msra.mxu0 %v2054_v57 }
 0x2f7   :  { %v902_v2 = vadd.f32 %v901_v63, %v900_v60 }
 0x2f9   :  { %v904_v6 = vadd.f32 %v903_v4, %v902_v2 }
 0x2fb   :  { %v906_v12 = vadd.f32 %v905_v9, %v904_v6 }
 0x2fd   :  { %v907_v14 = vrot.slane %v906_v12, 4 }
 0x2ff   :  { %v908_v10 = vadd.f32 %v907_v14, %v906_v12 }
 0x301   :  { %v909_v15 = vrot.slane %v908_v10, 2 }
 0x303   :  { %v910_v18 = vadd.f32 %v909_v15, %v908_v10  ;;  %v2055_v15 = vld [vmem:[%s2626_s2 + $0x20] sm:$0xff]  }
 0x304   :  { %1925 = vmatprep.subr.bf16.mxu0 %v2055_v15 }
 0x305   :  { %v911_v20 = vrot.slane %v910_v18, 1 }
 0x307   :  { %v912_v26 = vadd.f32 %v911_v20, %v910_v18 }
 0x309   :  { %v913_v5 = vmul.f32 0.01724138, %v912_v26 }
 0x30b   :  { %v914_v27 = vadd.f32 1e-05, %v913_v5 }
 0x30d   :  { %2073 = vrsqrt.f32 %v914_v27 }
 0x317   :  { %v2074_v45 = vpop.eup %2073 }
 0x318   :  { %v916_v23 = vmul.f32 %v2074_v45, %v851_v33 }
 0x31a   :  { %v917_v25 = vmul.f32 %v916_v23, %v875_v49  ;;  %v922_v28 = vrot.slane %v916_v23, %v2301_v0 }
 0x31c   :  { %v918_v13 = vsub.f32 %v852_v24, %v917_v25  ;;  %v923_v29 = vmul.f32 %v922_v28, %v2408_v3  ;;  %v924_v17 = vmul.f32 %v922_v28, %v2412_v8  ;;  %v925_v30 = vmul.f32 %v922_v28, %v2410_v7 }
 0x31d   :  { %v926_v16 = vmul.f32 %v922_v28, %v2416_v11  ;;  %v927_v32 = vmul.f32 %v922_v28, %v2424_v21  ;;  %v928_v43 = vmul.f32 %v922_v28, %v2430_v22  ;;  %v929_v34 = vmul.f32 %v922_v28, %v2426_v31 }
 0x31e   :  { %v934_v51 = vrot.slane %v918_v13, %v2301_v0  ;;  %v930_v49 = vmul.f32 %v922_v28, %v2432_v62 }
 0x320   :  { %v935_v59 = vadd.f32 %v934_v51, %v923_v29  ;;  %v936_v1 = vadd.f32 %v934_v51, %v924_v17  ;;  %v937_v36 = vadd.f32 %v934_v51, %v925_v30  ;;  %v938_v3 = vadd.f32 %v934_v51, %v926_v16 }
 0x321   :  { %v939_v37 = vadd.f32 %v934_v51, %v927_v32  ;;  %v940_v8 = vadd.f32 %v934_v51, %v928_v43  ;;  %v941_v38 = vadd.f32 %v934_v51, %v929_v34  ;;  %v942_v7 = vadd.f32 %v934_v51, %v930_v49 }
 0x322   :  { %v943_v39 = vmax.f32 %v935_v59, 0.0  ;;  %v944_v11 = vmax.f32 %v936_v1, 0.0  ;;  %v945_v40 = vmax.f32 %v937_v36, 0.0  ;;  %v946_v41 = vmax.f32 %v938_v3, 0.0 }
 0x323   :  { %v947_v42 = vmax.f32 %v939_v37, 0.0  ;;  %v948_v21 = vmax.f32 %v940_v8, 0.0  ;;  %v949_v44 = vmax.f32 %v941_v38, 0.0  ;;  %v950_v22 = vmax.f32 %v942_v7, 0.0 }
 0x324   :  { %951 = vst.msk [vmem:[#allocation2] sm:$0xff] %vm211_vm2, %v943_v39  ;;  %952 = vst.msk [vmem:[#allocation2 + $0x8] sm:$0xff] %vm211_vm2, %v944_v11  ;;  %v2056_v39 = vld [vmem:[%s2626_s2 + $0x28] sm:$0xff]   ;;  %v2057_v11 = vld [vmem:[%s2626_s2 + $0x30] sm:$0xff]  }
 0x325   :  { %953 = vst.msk [vmem:[#allocation2 + $0x10] sm:$0xff] %vm211_vm2, %v945_v40  ;;  %954 = vst.msk [vmem:[#allocation2 + $0x18] sm:$0xff] %vm211_vm2, %v946_v41  ;;  %v2058_v40 = vld [vmem:[%s2626_s2 + $0x38] sm:$0xff]   ;;  %v2059_v41 = vld [vmem:[%s2626_s2 + $0x40] sm:$0xff]  }
 0x326   :  { %955 = vst.msk [vmem:[#allocation2 + $0x20] sm:$0xff] %vm211_vm2, %v947_v42  ;;  %956 = vst.msk [vmem:[#allocation2 + $0x28] sm:$0xff] %vm211_vm2, %v948_v21  ;;  %v2060_v42 = vld [vmem:[%s2626_s2 + $0x48] sm:$0xff]   ;;  %v2061_v21 = vld [vmem:[%s2626_s2 + $0x50] sm:$0xff]  }
 0x327   :  { %957 = vst.msk [vmem:[#allocation2 + $0x30] sm:$0xff] %vm211_vm2, %v949_v44  ;;  %v2062_v44 = vld [vmem:[%s2626_s2 + $0x58] sm:$0xff]  }
 0x328   :  { %958 = vst.msk [vmem:[#allocation2 + $0x38] sm:$0x3] %vm866_vm5, %v950_v22  ;;  %v2063_v22 = vld [vmem:[%s2625_s3 + $0x80] sm:$0xff]  }
 0x329   :  { %1937 = vmatprep.subr.bf16.mxu1 %v2063_v22 }
 0x32a   :  { %1938 = vmatpush3.bf16.msra.mxu1 %v2063_v22 }
 0x32b   :  { %v959_v31 = vld [vmem:[#allocation2] ss:$2 sm:$0xff]  ;;  %v961_v19 = vld [vmem:[#allocation2 + $0x1] ss:$2 sm:$0xff] }
 0x32c   :  { %v960_v62 = vld [vmem:[#allocation2 + $0x10] ss:$2 sm:$0x3f]  ;;  %v962_v54 = vld [vmem:[#allocation2 + $0x11] ss:$2 sm:$0x3f]  ;;  %v963_v35 = vmax.f32 %v959_v31, %v961_v19 }
 0x32d   :  { %v990_v46 = vld [vmem:[#allocation2 + $0x1d] ss:$2 sm:$0xff]  ;;  %v994_v48 = vld [vmem:[#allocation2 + $0x1e] ss:$2 sm:$0xff]  ;;  %v964_v56 = vmax.f32 %v960_v62, %v962_v54  ;;  %v2065_v62 = vld [vmem:[%s2625_s3 + $0x90] sm:$0xff]  }
 0x32e   :  { %v992_v47 = vld [vmem:[#allocation2 + $0x2d] ss:$2 sm:$0x3f]  ;;  %v997_v52 = vmax.f32 %v990_v46, %v994_v48  ;;  %v975_v2 = vrot.slane %v963_v35, 1  ;;  %v968_v9 = vrot.slane %v963_v35, 7  ;;  %v2066_v46 = vld [vmem:[%s2625_s3 + $0x98] sm:$0xff]  }
 0x32f   :  { %v996_v50 = vld [vmem:[#allocation2 + $0x2e] ss:$2 sm:$0x3f]  ;;  %v976_v4 = vrot.slane %v964_v56, 1  ;;  %v969_v6 = vrot.slane %v964_v56, 7 }
 0x330   :  { %v998_v53 = vmax.f32 %v992_v47, %v996_v50  ;;  %v1007_v58 = vrot.slane %v997_v52, 1  ;;  %v1001_v63 = vrot.slane %v997_v52, 7  ;;  %v1022_v33 = vrot.slane %v997_v52, 2  ;;  %v2064_v31 = vld [vmem:[%s2625_s3 + $0x88] sm:$0xff]   ;;  %v2067_v47 = vld [vmem:[%s2625_s3 + $0xa0] sm:$0xff]  }
 0x331   :  { %v977_v20 = vsel %vm974_vm6, %v975_v2, %v976_v4  ;;  %v979_v26 = vsel %vm561_vm4, %v976_v4, 0.0  ;;  %v970_v5 = vsel %vm967_vm7, %v968_v9, %v969_v6  ;;  %v973_v36 = vsel %vm967_vm7, 0.0, %v968_v9  ;;  %1939 = vmatprep.subr.bf16.mxu1 %v2064_v31  ;;  %v2068_v48 = vld [vmem:[%s2625_s3 + $0xa8] sm:$0xff]   ;;  %v1746_v50 = vld [vmem:[%s2624_s4 + $0x6] ss:$0 sm:$0xff] }
 0x332   :  { %v1008_v60 = vrot.slane %v998_v53, 1  ;;  %v1002_v61 = vrot.slane %v998_v53, 7  ;;  %v2012_v27 = vpack.i.bf16 %v977_v20, %v979_v26  ;;  %v1023_v45 = vrot.slane %v998_v53, 2  ;;  %1940 = vmatpush3.bf16.msra.mxu1 %v2064_v31 }
 0x333   :  { %v1028_v23 = vsel %vm1021_vm8, %v964_v56, %v1022_v33  ;;  %v1006_v16 = vsel %vm967_vm7, 0.0, %v1001_v63  ;;  %1941 = vmatprep.subr.bf16.mxu1 %v2065_v62 }
 0x334   :  { %v1009_v12 = vsel %vm974_vm6, %v1007_v58, %v1008_v60  ;;  %v1011_v14 = vsel %vm561_vm4, %v1008_v60, 0.0  ;;  %v1003_v10 = vsel %vm967_vm7, %v1001_v63, %v1002_v61  ;;  %2013 = vrot.lane.b32.xlu1 %v2012_v27, %s2079_s30  ;;  %v1024_v24 = vsel %vm1021_vm8, %v1022_v33, %v1023_v45 }
 0x335   :  { %v2007_v18 = vpack.i.bf16 %v1011_v14, %v1009_v12  ;;  %v1039_v25 = vpack.c.bf16 %v1028_v23, %v963_v35  ;;  %v1040_v28 = vpack.c.bf16 %v1023_v45, %v1024_v24 }
 0x336   :  { %1942 = vmatpush3.bf16.msra.mxu1 %v2065_v62 }
 0x337   :  { %2008 = vrot.lane.b32.xlu0 %v2007_v18, %s2079_s30  ;;  %1943 = vmatprep.subr.bf16.mxu1 %v2066_v46 }
 0x33a   :  { %1944 = vmatpush3.bf16.msra.mxu1 %v2066_v46 }
 0x33b   :  { %1945 = vmatprep.subr.bf16.mxu1 %v2067_v47 }
 0x33e   :  { %1946 = vmatpush3.bf16.msra.mxu1 %v2067_v47 }
 0x33f   :  { %1947 = vmatprep.subr.bf16.mxu1 %v2068_v48 }
 0x342   :  { %1948 = vmatpush3.bf16.msra.mxu1 %v2068_v48 }
 0x3a6   :  { %v2014_v30 = vpop.permute.xlu1 %2013 }
 0x3a7   :  { %v2016_v51 = vunpack.i.h.bf16 %v2014_v30  ;;  %v2015_v32 = vunpack.i.l.bf16 %v2014_v30 }
 0x3a9   :  { %v2009_v13 = vpop.permute.xlu0 %2008  ;;  %v988_v1 = vsel %vm211_vm2, %v970_v5, %v2015_v32  ;;  %v987_v37 = vsel %vm211_vm2, %v973_v36, %v2016_v51 }
 0x3aa   :  { %v2011_v29 = vunpack.i.h.bf16 %v2009_v13  ;;  %v2010_v17 = vunpack.i.l.bf16 %v2009_v13 }
 0x3ac   :  { %v1019_v43 = vsel %vm211_vm2, %v1006_v16, %v2010_v17  ;;  %v1020_v34 = vsel %vm211_vm2, %v1003_v10, %v2011_v29 }
 0x3ad   :  { %v1031_v49 = vrot.slane %v1019_v43, 2  ;;  %v1032_v59 = vrot.slane %v1020_v34, 2 }
 0x3af   :  { %v1033_v3 = vsel %vm1021_vm8, %v1031_v49, %v1032_v59  ;;  %v1037_v8 = vsel %vm1021_vm8, %v988_v1, %v1031_v49 }
 0x3b0   :  { %v1051_v38 = vpack.c.bf16 %v1032_v59, %v1033_v3  ;;  %v1050_v7 = vpack.c.bf16 %v1037_v8, %v987_v37  ;;  %v1253_v37 = vld [vmem:[%s2624_s4 + $0x7] sm:$0x1] }
 0x3b2   :  { %1921 = vmatprep.mubr.bf16.mxu0 %v1050_v7  ;;  %v1254_v7 = vld [vmem:[%s2624_s4 + $0x8] sm:$0x1] }
 0x3b3   :  { %1922 = vmatmul.mubr.bf16.vlgmr.msra.gmra.mrb[16].mxu0 %v1051_v38 }
 0x3b4   :  { %1926 = vmatpush3.bf16.msra.mxu0 %v2055_v15  ;;  %1933 = vmatprep.mubr.msk.bf16.mxu0 %vm211_vm2, %v1039_v25 }
 0x3b5   :  { %1927 = vmatprep.subr.bf16.mxu0 %v2056_v39 }
 0x3b8   :  { %1928 = vmatpush3.bf16.msra.mxu0 %v2056_v39 }
 0x3b9   :  { %1929 = vmatprep.subr.bf16.mxu0 %v2057_v11 }
 0x3bc   :  { %1930 = vmatpush3.bf16.msra.mxu0 %v2057_v11 }
 0x3bd   :  { %1931 = vmatprep.subr.bf16.mxu0 %v2058_v40 }
 0x3c0   :  { %1932 = vmatpush3.bf16.msra.mxu0 %v2058_v40 }
 0x3c1   :  { %1957 = vmatprep.subr.bf16.mxu0 %v2059_v41 }
 0x3c3   :  { %1934 = vmatmul.mubr.msk.bf16.vlgmr.msra.gmra.mrb[16].mxu0 %vm211_vm2, %v1040_v28 }
 0x3c4   :  { %1958 = vmatpush3.bf16.msra.mxu0 %v2059_v41 }
 0x3c5   :  { %1959 = vmatprep.subr.bf16.mxu0 %v2060_v42 }
 0x3c8   :  { %1960 = vmatpush3.bf16.msra.mxu0 %v2060_v42 }
 0x3c9   :  { %1961 = vmatprep.subr.bf16.mxu0 %v2061_v21 }
 0x3cc   :  { %1962 = vmatpush3.bf16.msra.mxu0 %v2061_v21 }
 0x3cd   :  { %1963 = vmatprep.subr.bf16.mxu0 %v2062_v44 }
 0x3d0   :  { %1964 = vmatpush3.bf16.msra.mxu0 %v2062_v44 }
 0x496   :  { %v1935_v52 = vpop.f32.mrb[16].mxu0 }
 0x497   :  { %v1230_v53 = vpop.f32.mrb[17].mxu0  ;;  %v1251_v35 = vadd.f32 %v1935_v52, %v1746_v50 }
 0x498   :  { %v1249_v19 = vadd.f32 %v1746_v50, %v1230_v53  ;;  %v1936_v54 = vpop.f32.mrb[18].mxu0 }
 0x499   :  { %v1233_v55 = vpop.f32.mrb[19].mxu0  ;;  %v1252_v58 = vadd.f32 %v1936_v54, %v1746_v50  ;;  %v1258_v63 = vsel %vm211_vm2, %v1251_v35, 0.0 }
 0x49a   :  { %v1250_v56 = vadd.f32 %v1746_v50, %v1233_v55  ;;  %v1255_v57 = vsel %vm211_vm2, %v1249_v19, 0.0 }
 0x49b   :  { %v1260_v4 = vsel %vm241_vm3, %v1252_v58, 0.0 }
 0x49c   :  { %v1256_v60 = vsel %vm211_vm2, %v1250_v56, 0.0 }
 0x49d   :  { %v1257_v61 = vadd.f32 %v1256_v60, %v1255_v57 }
 0x49f   :  { %v1259_v2 = vadd.f32 %v1258_v63, %v1257_v61  ;;  %v2070_v63 = vld [vmem:[%s2625_s3 + $0xb8] sm:$0xff]  }
 0x4a1   :  { %v1261_v6 = vadd.f32 %v1260_v4, %v1259_v2 }
 0x4a3   :  { %v1262_v9 = vrot.slane %v1261_v6, 4 }
 0x4a5   :  { %v1263_v12 = vadd.f32 %v1262_v9, %v1261_v6 }
 0x4a7   :  { %v1264_v14 = vrot.slane %v1263_v12, 2 }
 0x4a9   :  { %v1265_v10 = vadd.f32 %v1264_v14, %v1263_v12 }
 0x4ab   :  { %v1266_v15 = vrot.slane %v1265_v10, 1 }
 0x4ad   :  { %v1267_v18 = vadd.f32 %v1266_v15, %v1265_v10 }
 0x4af   :  { %v1268_v20 = vmul.f32 0.035714287, %v1267_v18 }
 0x4b1   :  { %v1269_v26 = vsub.f32 %v1249_v19, %v1268_v20  ;;  %v1270_v5 = vsub.f32 %v1250_v56, %v1268_v20  ;;  %v1271_v27 = vsub.f32 %v1251_v35, %v1268_v20  ;;  %v1272_v33 = vsub.f32 %v1252_v58, %v1268_v20 }
 0x4b3   :  { %v1273_v45 = vmul.f32 %v1269_v26, %v1269_v26  ;;  %v1274_v23 = vmul.f32 %v1270_v5, %v1270_v5  ;;  %v1275_v24 = vmul.f32 %v1271_v27, %v1271_v27  ;;  %v1276_v25 = vmul.f32 %v1272_v33, %v1272_v33 }
 0x4b5   :  { %v1277_v28 = vsel %vm211_vm2, %v1273_v45, 0.0  ;;  %v1278_v13 = vsel %vm211_vm2, %v1274_v23, 0.0  ;;  %v1280_v17 = vsel %vm211_vm2, %v1275_v24, 0.0  ;;  %v1282_v16 = vsel %vm241_vm3, %v1276_v25, 0.0 }
 0x4b6   :  { %v1279_v29 = vadd.f32 %v1278_v13, %v1277_v28 }
 0x4b8   :  { %v1281_v30 = vadd.f32 %v1280_v17, %v1279_v29 }
 0x4ba   :  { %v1283_v51 = vadd.f32 %v1282_v16, %v1281_v30 }
 0x4bc   :  { %v1284_v32 = vrot.slane %v1283_v51, 4 }
 0x4be   :  { %v1285_v43 = vadd.f32 %v1284_v32, %v1283_v51 }
 0x4c0   :  { %v1286_v34 = vrot.slane %v1285_v43, 2 }
 0x4c2   :  { %v1287_v49 = vadd.f32 %v1286_v34, %v1285_v43 }
 0x4c4   :  { %v1288_v59 = vrot.slane %v1287_v49, 1 }
 0x4c6   :  { %v1289_v1 = vadd.f32 %v1288_v59, %v1287_v49 }
 0x4c8   :  { %v1290_v36 = vmul.f32 0.035714287, %v1289_v1 }
 0x4ca   :  { %v1291_v3 = vadd.f32 1e-05, %v1290_v36 }
 0x4cc   :  { %2075 = vrsqrt.f32 %v1291_v3 }
 0x4d6   :  { %v2076_v8 = vpop.eup %2075 }
 0x4d7   :  { %v1293_v38 = vmul.f32 %v2076_v8, %v1253_v37 }
 0x4d9   :  { %v1294_v39 = vmul.f32 %v1293_v38, %v1268_v20  ;;  %v1299_v11 = vrot.slane %v1293_v38, %v2301_v0 }
 0x4db   :  { %v1295_v40 = vsub.f32 %v1254_v7, %v1294_v39  ;;  %v1301_v41 = vmul.f32 %v1299_v11, %v1250_v56  ;;  %v1302_v42 = vmul.f32 %v1299_v11, %v1251_v35  ;;  %v1303_v21 = vmul.f32 %v1299_v11, %v1252_v58  ;;  %v2069_v35 = vld [vmem:[%s2625_s3 + $0xb0] sm:$0xff]   ;;  %v1785_v7 = vld [vmem:[%s2624_s4 + $0x9] ss:$0 sm:$0xff] }
 0x4dc   :  { %v1300_v22 = vmul.f32 %v1299_v11, %v1249_v19  ;;  %1949 = vmatprep.subr.bf16.mxu1 %v2069_v35 }
 0x4dd   :  { %v1307_v44 = vrot.slane %v1295_v40, %v2301_v0  ;;  %1950 = vmatpush3.bf16.msra.mxu1 %v2069_v35 }
 0x4de   :  { %1951 = vmatprep.subr.bf16.mxu1 %v2070_v63 }
 0x4df   :  { %v1309_v31 = vadd.f32 %v1307_v44, %v1301_v41  ;;  %v1308_v62 = vadd.f32 %v1307_v44, %v1300_v22  ;;  %v1310_v46 = vadd.f32 %v1307_v44, %v1302_v42  ;;  %v1311_v47 = vadd.f32 %v1307_v44, %v1303_v21 }
 0x4e1   :  { %v1313_v48 = vmax.f32 %v1309_v31, 0.0  ;;  %v1312_v50 = vmax.f32 %v1308_v62, 0.0  ;;  %v1314_v52 = vmax.f32 %v1310_v46, 0.0  ;;  %v1315_v53 = vmax.f32 %v1311_v47, 0.0  ;;  %1952 = vmatpush3.bf16.msra.mxu1 %v2070_v63 }
 0x4e3   :  { %v1374_v54 = vpack.c.bf16 %v1313_v48, %v1312_v50  ;;  %v1375_v55 = vpack.c.bf16 %v1315_v53, %v1314_v52  ;;  %v1324_v57 = vrot.slane %v1312_v50, 1  ;;  %v1325_v60 = vrot.slane %v1313_v48, 1 }
 0x4e4   :  { %v1319_v56 = vrot.slane %v1313_v48, 7  ;;  %v1349_v58 = vrot.slane %v1314_v52, 7  ;;  %v1351_v19 = vrot.slane %v1315_v53, 7  ;;  %v1318_v61 = vrot.slane %v1312_v50, 7 }
 0x4e5   :  { %1965 = vmatprep.mubr.msk.bf16.mxu0 %vm211_vm2, %v1374_v54  ;;  %v1326_v2 = vsel %vm974_vm6, %v1324_v57, %v1325_v60  ;;  %v1328_v4 = vsel %vm561_vm4, %v1325_v60, 0.0  ;;  %v1341_v6 = vrot.slane %v1313_v48, 5  ;;  %v1342_v9 = vrot.slane %v1314_v52, 5 }
 0x4e6   :  { %1966 = vmatmul.mubr.msk.bf16.vlgmr.msra.gmra.mrb[20].mxu0 %vm211_vm2, %v1375_v55  ;;  %v2022_v12 = vpack.i.bf16 %v1326_v2, %v1328_v4  ;;  %v1350_v14 = vsel %vm967_vm7, %v1319_v56, %v1349_v58  ;;  %v1352_v10 = vsel %vm967_vm7, %v1349_v58, %v1351_v19  ;;  %v1320_v15 = vsel %vm967_vm7, %v1318_v61, %v1319_v56 }
 0x4e7   :  { %v1354_v18 = vsel %vm561_vm4, %v1352_v10, 0.0  ;;  %v1343_v20 = vsel %vm1340_vm9, %v1341_v6, %v1342_v9  ;;  %v1344_v26 = vrot.slane %v1315_v53, 5  ;;  %v1323_v32 = vsel %vm967_vm7, 0.0, %v1318_v61 }
 0x4e8   :  { %2023 = vrot.lane.b32.xlu1 %v2022_v12, %s2079_s30  ;;  %v2017_v5 = vpack.i.bf16 %v1354_v18, %v1350_v14  ;;  %v1348_v13 = vsel %vm967_vm7, 0.0, %v1343_v20 }
 0x4e9   :  { %v1345_v27 = vsel %vm1340_vm9, %v1342_v9, %v1344_v26 }
 0x4ea   :  { %2018 = vrot.lane.b32.xlu0 %v2017_v5, %s2079_s30 }
 0x55a   :  { %v2024_v33 = vpop.permute.xlu1 %2023 }
 0x55b   :  { %v2025_v23 = vunpack.i.l.bf16 %v2024_v33  ;;  %v2026_v28 = vunpack.i.h.bf16 %v2024_v33 }
 0x55c   :  { %v2019_v45 = vpop.permute.xlu0 %2018 }
 0x55d   :  { %v2021_v24 = vunpack.i.h.bf16 %v2019_v45  ;;  %v2020_v25 = vunpack.i.l.bf16 %v2019_v45  ;;  %v1337_v51 = vsel %vm211_vm2, %v1320_v15, %v2025_v23  ;;  %v1336_v34 = vsel %vm211_vm2, %v1323_v32, %v2026_v28  ;;  %v1589_v32 = vld [vmem:[%s2624_s4 + $0xb] sm:$0x1] }
 0x55f   :  { %v1363_v29 = vsel %vm211_vm2, %v1345_v27, %v2021_v24  ;;  %v1362_v17 = vsel %vm211_vm2, %v1348_v13, %v2020_v25 }
 0x560   :  { %v1367_v30 = vrot.slane %v1363_v29, 2  ;;  %v1366_v16 = vrot.slane %v1362_v17, 2 }
 0x562   :  { %v1368_v43 = vsel %vm1021_vm8, %v1366_v16, %v1367_v30  ;;  %v1372_v49 = vsel %vm1021_vm8, %v1337_v51, %v1366_v16 }
 0x563   :  { %v1386_v59 = vpack.c.bf16 %v1367_v30, %v1368_v43  ;;  %v1385_v1 = vpack.c.bf16 %v1372_v49, %v1336_v34  ;;  %v1588_v30 = vld [vmem:[%s2624_s4 + $0xa] sm:$0x1] }
 0x565   :  { %1953 = vmatprep.mubr.bf16.mxu1 %v1385_v1 }
 0x566   :  { %1954 = vmatmul.mubr.bf16.vlgmr.msra.gmra.mrb[8].mxu1 %v1386_v59 }
 0x5b9   :  { %v1967_v36 = vpop.f32.mrb[20].mxu0 }
 0x5ba   :  { %v1565_v3 = vpop.f32.mrb[21].mxu0 }
 0x5bb   :  { %v1968_v37 = vpop.f32.mrb[22].mxu0 }
 0x5bc   :  { %v1568_v8 = vpop.f32.mrb[23].mxu0 }
 0x639   :  { %v1955_v38 = vpop.f32.mrb[8].mxu1 }
 0x63a   :  { %v1574_v39 = vadd.f32 %v1967_v36, %v1955_v38  ;;  %v1486_v11 = vpop.f32.mrb[9].mxu1 }
 0x63b   :  { %v1566_v40 = vadd.f32 %v1565_v3, %v1486_v11  ;;  %v1956_v41 = vpop.f32.mrb[10].mxu1 }
 0x63c   :  { %v1577_v42 = vadd.f32 %v1968_v37, %v1956_v41  ;;  %v1489_v21 = vpop.f32.mrb[11].mxu1  ;;  %v1586_v31 = vadd.f32 %v1785_v7, %v1574_v39 }
 0x63d   :  { %v1584_v44 = vadd.f32 %v1785_v7, %v1566_v40  ;;  %v1569_v22 = vadd.f32 %v1568_v8, %v1489_v21 }
 0x63e   :  { %v1587_v47 = vadd.f32 %v1785_v7, %v1577_v42  ;;  %v1593_v52 = vsel %vm211_vm2, %v1586_v31, 0.0 }
 0x63f   :  { %v1585_v62 = vadd.f32 %v1785_v7, %v1569_v22  ;;  %v1590_v46 = vsel %vm211_vm2, %v1584_v44, 0.0 }
 0x640   :  { %v1595_v54 = vsel %vm241_vm3, %v1587_v47, 0.0 }
 0x641   :  { %v1591_v48 = vsel %vm211_vm2, %v1585_v62, 0.0 }
 0x642   :  { %v1592_v50 = vadd.f32 %v1591_v48, %v1590_v46 }
 0x644   :  { %v1594_v53 = vadd.f32 %v1593_v52, %v1592_v50 }
 0x646   :  { %v1596_v55 = vadd.f32 %v1595_v54, %v1594_v53 }
 0x648   :  { %v1597_v57 = vrot.slane %v1596_v55, 4 }
 0x64a   :  { %v1598_v60 = vadd.f32 %v1597_v57, %v1596_v55 }
 0x64c   :  { %v1599_v35 = vrot.slane %v1598_v60, 2 }
 0x64e   :  { %v1600_v56 = vadd.f32 %v1599_v35, %v1598_v60 }
 0x650   :  { %v1601_v58 = vrot.slane %v1600_v56, 1 }
 0x652   :  { %v1602_v19 = vadd.f32 %v1601_v58, %v1600_v56 }
 0x654   :  { %v1603_v61 = vmul.f32 0.035714287, %v1602_v19 }
 0x656   :  { %v1604_v63 = vsub.f32 %v1584_v44, %v1603_v61  ;;  %v1605_v2 = vsub.f32 %v1585_v62, %v1603_v61  ;;  %v1606_v4 = vsub.f32 %v1586_v31, %v1603_v61  ;;  %v1607_v6 = vsub.f32 %v1587_v47, %v1603_v61 }
 0x658   :  { %v1608_v9 = vmul.f32 %v1604_v63, %v1604_v63  ;;  %v1609_v12 = vmul.f32 %v1605_v2, %v1605_v2  ;;  %v1610_v14 = vmul.f32 %v1606_v4, %v1606_v4  ;;  %v1611_v10 = vmul.f32 %v1607_v6, %v1607_v6 }
 0x65a   :  { %v1612_v15 = vsel %vm211_vm2, %v1608_v9, 0.0  ;;  %v1613_v18 = vsel %vm211_vm2, %v1609_v12, 0.0  ;;  %v1615_v26 = vsel %vm211_vm2, %v1610_v14, 0.0  ;;  %v1617_v27 = vsel %vm241_vm3, %v1611_v10, 0.0 }
 0x65b   :  { %v1614_v20 = vadd.f32 %v1613_v18, %v1612_v15 }
 0x65d   :  { %v1616_v5 = vadd.f32 %v1615_v26, %v1614_v20 }
 0x65f   :  { %v1618_v33 = vadd.f32 %v1617_v27, %v1616_v5 }
 0x661   :  { %v1619_v45 = vrot.slane %v1618_v33, 4 }
 0x663   :  { %v1620_v23 = vadd.f32 %v1619_v45, %v1618_v33 }
 0x665   :  { %v1621_v24 = vrot.slane %v1620_v23, 2 }
 0x667   :  { %v1622_v25 = vadd.f32 %v1621_v24, %v1620_v23 }
 0x669   :  { %v1623_v28 = vrot.slane %v1622_v25, 1 }
 0x66b   :  { %v1624_v13 = vadd.f32 %v1623_v28, %v1622_v25 }
 0x66d   :  { %v1625_v29 = vmul.f32 0.035714287, %v1624_v13 }
 0x66f   :  { %v1626_v17 = vadd.f32 1e-05, %v1625_v29 }
 0x671   :  { %2077 = vrsqrt.f32 %v1626_v17 }
 0x67b   :  { %v2078_v16 = vpop.eup %2077 }
 0x67c   :  { %v1628_v51 = vmul.f32 %v2078_v16, %v1588_v30 }
 0x67e   :  { %v1629_v43 = vmul.f32 %v1628_v51, %v1603_v61  ;;  %v1634_v34 = vrot.slane %v1628_v51, %v2301_v0 }
 0x680   :  { %v1636_v49 = vmul.f32 %v1634_v34, %v1585_v62  ;;  %v1630_v59 = vsub.f32 %v1589_v32, %v1629_v43  ;;  %v1637_v1 = vmul.f32 %v1634_v34, %v1586_v31  ;;  %v1638_v36 = vmul.f32 %v1634_v34, %v1587_v47 }
 0x681   :  { %v1635_v37 = vmul.f32 %v1634_v34, %v1584_v44 }
 0x682   :  { %v1642_v3 = vrot.slane %v1630_v59, %v2301_v0 }
 0x684   :  { %v1645_v8 = vadd.f32 %v1642_v3, %v1637_v1  ;;  %v1646_v38 = vadd.f32 %v1642_v3, %v1638_v36  ;;  %v1644_v7 = vadd.f32 %v1642_v3, %v1636_v49  ;;  %v1643_v39 = vadd.f32 %v1642_v3, %v1635_v37 }
 0x686   :  { %v1649_v11 = vmax.f32 %v1645_v8, 0.0  ;;  %v1650_v40 = vmax.f32 %v1646_v38, 0.0  ;;  %v1648_v41 = vmax.f32 %v1644_v7, 0.0  ;;  %v1647_v31 = vmax.f32 %v1643_v39, 0.0 }
 0x688   :  { %v1656_v42 = vrot.slane %v1649_v11, 6  ;;  %v1658_v21 = vrot.slane %v1650_v40, 6  ;;  %v1655_v22 = vrot.slane %v1648_v41, 6 }
 0x68a   :  { %v1659_v46 = vsel %vm1654_vm10, %v1656_v42, %v1658_v21  ;;  %v1657_v48 = vsel %vm1654_vm10, %v1655_v22, %v1656_v42 }
 0x68b   :  { %1662 = vrot.lane.b32.xlu1 %v1659_v46, %s2079_s30  ;;  %1660 = vrot.lane.b32.xlu0 %v1657_v48, %s2079_s30 }
 0x6fd   :  { %v1663_v0 = vpop.permute.xlu1 %1662  ;;  %v1661_v44 = vpop.permute.xlu0 %1660 }
 0x6fe   :  { %v1667_v62 = vsel %vm211_vm2, %v1648_v41, %v1663_v0  ;;  %v1666_v47 = vsel %vm211_vm2, %v1647_v31, %v1661_v44 }
 0x6ff   :  { %1669 = vst [vmem:[%s2627_s5 + $0x8] sm:$0x3f] %v1667_v62  ;;  %1668 = vst [vmem:[%s2627_s5] sm:$0xff] %v1666_v47 }

</bundles_post_ra>
